<compile_context>
chip_gen: v6e
topology: v6e:2x2x1
jax: 0.10.0
libtpu: 0.0.40
codegen_flags: <defaults>
</compile_context>

<pallas_src>
import math

import jax
import jax.numpy as jnp
from jax.experimental import pallas as pl
from jax.experimental.pallas import tpu as pltpu

KSIZE = 3
PAD = 2


def _round_up(v, m):
    return ((v + m - 1) // m) * m


def _make_kernel(Nb, C, H, W, Hp, Ho, Wacc, Wse):
    def kernel(x_ref, w_ref, b_ref, o_ref, xpad_ref):
        # x_ref:    (Nb, C, H, W)     VMEM   unpadded input block
        # w_ref:    (C*9,)            SMEM   conv weights (scalar reads)
        # b_ref:    (1,)              SMEM   bias
        # o_ref:    (Nb, Ho, Wacc)    VMEM   lane-dense output slab
        # xpad_ref: (Nb, C, Hp, Wse)  VMEM   zero-padded input scratch
        f32 = jnp.float32

        # --- in-kernel zero padding -------------------------------------
        # Only the padding ring actually needs zeros (the interior is fully
        # overwritten every step), but in this rows-on-sublanes / 128-lane
        # layout the pad columns share vregs with the data columns, so one
        # dense zero of the first 128-lane band costs fewer vector stores
        # than per-column masked halo stores.  Lanes >= Wacc are only ever
        # read into discarded output columns and are left untouched.
        xpad_ref[:, :, :, :Wacc] = jnp.zeros((Nb, C, Hp, Wacc), f32)
        # Single sliced 4-D assignment of the whole input block (replaces H
        # per-row masked micro-copies).
        xpad_ref[:, :, PAD:PAD + H, PAD:PAD + W] = x_ref[...].astype(f32)

        # --- 3x3 conv: 9 dense shifted window views x C scalar FMAs ------
        # Each tap view covers the whole (Nb, C) slab at window offset
        # (kh, kw); operands are sublane-dense (Ho rows) and lane-dense
        # (Wacc lanes).  NOTE: pltpu.roll of a single resident slab (XLU) is
        # an equivalent alternative to these 9 window loads if they ever show
        # up as materialized VMEM copies in the bundle dump.
        acc = jnp.zeros((Nb, Ho, Wacc), f32)
        for kh in range(KSIZE):
            for kw in range(KSIZE):
                tap = xpad_ref[:, :, kh:kh + Ho, kw:kw + Wacc]  # (Nb,C,Ho,Wacc)
                # TODO(synk): for large C, chunk this loop with
                # lax.fori_loop(..., unroll=True) to bound vreg live ranges.
                for c in range(C):
                    wk = w_ref[(c * KSIZE + kh) * KSIZE + kw]
                    acc = acc + tap[:, c] * wk

        o_ref[...] = (acc + b_ref[0]).astype(o_ref.dtype)

    return kernel


def _num_tensorcores_per_chip():
    """Best-effort TensorCores-per-chip (v5e/v6e = 1; v4/v5p/v7x = 2)."""
    try:
        kind = jax.devices()[0].device_kind.lower()
    except Exception:
        return 2
    if any(m in kind for m in ("v5e", "v5 lite", "v6e", "v6 lite", "trillium")):
        return 1
    return 2


def _vmem_capacity_bytes():
    try:
        return int(pltpu.get_tpu_info().vmem_capacity_bytes)
    except Exception:
        return 64 * 2**20  # conservative default: v7x per-TensorCore VMEM


def _step_vmem_bytes(nb, C, H, W, Ho, Hp, Wacc, Wse):
    """Rough per-grid-step VMEM footprint (tile-padded f32, double buffers)."""
    in_blk = nb * C * _round_up(H, 8) * _round_up(W, 128) * 4 * 2
    out_blk = nb * _round_up(Ho, 8) * Wacc * 4 * 2
    scratch = nb * C * _round_up(Hp, 8) * Wse * 4
    return in_blk + out_blk + scratch


def simple_fc_discriminator(x, weight, bias):
    """Forward of SimpleFCDiscriminator: y = Conv2d(C, 1, k=3, s=1, p=2)(x).

    x: (N, C, H, W) float32; weight: (1, C, 3, 3); bias: (1,).
    Returns (N, 1, H + 2, W + 2) float32.
    """
    N, C, H, W = x.shape
    assert weight.shape == (1, C, KSIZE, KSIZE) and bias.shape == (1,)

    Hp, Wp = H + 2 * PAD, W + 2 * PAD          # padded input spatial dims
    Ho, Wo = Hp - KSIZE + 1, Wp - KSIZE + 1    # conv output dims (= H+2, W+2)
    Wacc = _round_up(Wo, 128)                  # lane-dense output slab width
    Wse = Wacc + 128                           # scratch row width (tap headroom)

    # --- generation-aware batch folding & VMEM budget -----------------------
    # Fold several images per grid step (per-step overhead ~0.35us), but on
    # multi-TensorCore chips keep >= 2 grid steps so the 'parallel' batch axis
    # can actually be sharded across cores.
    n_tc = _num_tensorcores_per_chip()
    vmem_budget = (_vmem_capacity_bytes() * 5) // 8
    max_nb = N if (n_tc == 1 or N == 1) else max(1, N // 2)
    Nb = 1
    for cand in range(1, max_nb + 1):
        if N % cand == 0 and _step_vmem_bytes(
                cand, C, H, W, Ho, Hp, Wacc, Wse) <= vmem_budget:
            Nb = cand
    NB = N // Nb
    step_bytes = _step_vmem_bytes(Nb, C, H, W, Ho, Hp, Wacc, Wse)
    vmem_limit = int(min(vmem_budget, max(4 * step_bytes, 16 * 2**20)))
    # TODO(synk): for very large C*H*W (a whole padded image no longer fits
    # the VMEM budget even at Nb=1) add an H- or C-tiling 'arbitrary' grid
    # axis with an f32 accumulator scratch.
    # TODO(synk): accept bf16 activations (accumulate in f32) when the
    # producer already provides them (v6e/v7x only; no bf16 VPU on v5e).

    kernel = _make_kernel(Nb, C, H, W, Hp, Ho, Wacc, Wse)

    w_flat = weight.astype(jnp.float32).reshape(-1)  # (C*9,) -> SMEM
    b_flat = bias.astype(jnp.float32).reshape(-1)    # (1,)   -> SMEM

    out_slab = pl.pallas_call(
        kernel,
        out_shape=jax.ShapeDtypeStruct((N, Ho, Wacc), x.dtype),
        grid=(NB,),
        in_specs=[
            pl.BlockSpec((Nb, C, H, W), lambda n: (n, 0, 0, 0)),
            pl.BlockSpec(memory_space=pltpu.MemorySpace.SMEM),
            pl.BlockSpec(memory_space=pltpu.MemorySpace.SMEM),
        ],
        out_specs=pl.BlockSpec((Nb, Ho, Wacc), lambda n: (n, 0, 0)),
        scratch_shapes=[pltpu.VMEM((Nb, C, Hp, Wse), jnp.float32)],
        compiler_params=pltpu.CompilerParams(
            dimension_semantics=("parallel",),
            vmem_limit_bytes=vmem_limit),
    )(x, w_flat, b_flat)

    # Drop the garbage lane columns wo in [Wo, Wacc) and restore NCHW.
    return out_slab[:, :, :Wo][:, None, :, :]


def init_params(key, in_channels):
    """Deterministic re-implementation of the module's init_weights():
    kaiming_uniform_(weight, mode='fan_out') with default a=0, bias = 0."""
    fan_out = 1 * KSIZE * KSIZE
    gain = math.sqrt(2.0)
    bound = gain * math.sqrt(3.0 / fan_out)
    weight = jax.random.uniform(
        key, (1, in_channels, KSIZE, KSIZE),
        minval=-bound, maxval=bound, dtype=jnp.float32)
    bias = jnp.zeros((1,), dtype=jnp.float32)
    return weight, bias


if __name__ == "__main__":
    key = jax.random.PRNGKey(0)
    k_x, k_w = jax.random.split(key)

    N, C, H, W = 2, 4, 16, 16
    x = jax.random.normal(k_x, (N, C, H, W), dtype=jnp.float32)
    weight, bias = init_params(k_w, C)

    out = simple_fc_discriminator(x, weight, bias)
    out = jax.block_until_ready(out)

    # Sanity check against XLA's conv (same NCHW / OIHW convention as torch).
    ref = jax.lax.conv_general_dilated(
        x, weight, window_strides=(1, 1), padding=[(PAD, PAD), (PAD, PAD)],
        dimension_numbers=("NCHW", "OIHW", "NCHW")) + bias[None, :, None, None]
    assert out.shape == (N, 1, H + 2, W + 2), out.shape
    assert jnp.allclose(out, ref, atol=1e-4, rtol=1e-4), \
        float(jnp.max(jnp.abs(out - ref)))

    print("KERNEL_OK")
</pallas_src>

<mosaic_0001>
module attributes {stable_mosaic.version = 11 : i64} {
  func.func @kernel(%arg0: i32, %arg1: memref<1x4x16x16xf32, #tpu.memory_space<vmem>>, %arg2: memref<36xf32, #tpu.memory_space<smem>>, %arg3: memref<1xf32, #tpu.memory_space<smem>>, %arg4: memref<1x18x128xf32, #tpu.memory_space<vmem>>, %arg5: memref<1x4x20x256xf32, #tpu.memory_space<vmem>>) attributes {dimension_semantics = [#tpu.dimension_semantics<parallel>], iteration_bounds = array<i64: 2>, scalar_prefetch = 0 : i64, scratch_operands = 1 : i64, tpu.core_type = #tpu.core_type<tc>, window_params = [{transform_indices = @transform_0, window_bounds = array<i64: 1, 4, 16, 16>}, {transform_indices = @transform_1, window_bounds = array<i64: 36>}, {transform_indices = @transform_2, window_bounds = array<i64: 1>}, {transform_indices = @transform_3, window_bounds = array<i64: 1, 18, 128>}]} {
    %cst = arith.constant 0.000000e+00 : f32
    %0 = vector.broadcast %cst : f32 to vector<1x4x20x128xf32>
    %c0 = arith.constant 0 : index
    %c0_0 = arith.constant 0 : index
    %c0_1 = arith.constant 0 : index
    %c0_2 = arith.constant 0 : index
    %1 = vector.load %arg5[%c0, %c0_0, %c0_1, %c0_2] : memref<1x4x20x256xf32, #tpu.memory_space<vmem>>, vector<1x4x20x128xf32>
    tpu.vector_store %arg5[%c0, %c0_0, %c0_1, %c0_2], %0 {strides = array<i32>} : memref<1x4x20x256xf32, #tpu.memory_space<vmem>>, vector<1x4x20x128xf32>,
    %c0_3 = arith.constant 0 : index
    %c0_4 = arith.constant 0 : index
    %c0_5 = arith.constant 0 : index
    %c0_6 = arith.constant 0 : index
    %2 = vector.load %arg1[%c0_3, %c0_4, %c0_5, %c0_6] : memref<1x4x16x16xf32, #tpu.memory_space<vmem>>, vector<1x4x16x16xf32>
    %c0_7 = arith.constant 0 : index
    %c0_8 = arith.constant 0 : index
    %c2 = arith.constant 2 : index
    %c2_9 = arith.constant 2 : index
    %3 = vector.load %arg5[%c0_7, %c0_8, %c2, %c2_9] : memref<1x4x20x256xf32, #tpu.memory_space<vmem>>, vector<1x4x16x16xf32>
    tpu.vector_store %arg5[%c0_7, %c0_8, %c2, %c2_9], %2 {strides = array<i32>} : memref<1x4x20x256xf32, #tpu.memory_space<vmem>>, vector<1x4x16x16xf32>,
    %cst_10 = arith.constant 0.000000e+00 : f32
    %4 = vector.broadcast %cst_10 : f32 to vector<1x18x128xf32>
    %c0_11 = arith.constant 0 : index
    %c0_12 = arith.constant 0 : index
    %c0_13 = arith.constant 0 : index
    %c0_14 = arith.constant 0 : index
    %5 = vector.load %arg5[%c0_11, %c0_12, %c0_13, %c0_14] : memref<1x4x20x256xf32, #tpu.memory_space<vmem>>, vector<1x4x18x128xf32>
    %c0_15 = arith.constant 0 : index
    %6 = memref.load %arg2[%c0_15] : memref<36xf32, #tpu.memory_space<smem>>
    %7 = vector.extract_strided_slice %5 {offsets = [0, 0, 0, 0], sizes = [1, 1, 18, 128], strides = [1, 1, 1, 1]} : vector<1x4x18x128xf32> to vector<1x1x18x128xf32>
    %8 = vector.shape_cast %7 : vector<1x1x18x128xf32> to vector<1x18x128xf32>
    %9 = vector.broadcast %6 : f32 to vector<1x18x128xf32>
    %10 = arith.mulf %8, %9 : vector<1x18x128xf32>
    %11 = arith.addf %4, %10 : vector<1x18x128xf32>
    %c9 = arith.constant 9 : index
    %12 = memref.load %arg2[%c9] : memref<36xf32, #tpu.memory_space<smem>>
    %13 = vector.extract_strided_slice %5 {offsets = [0, 1, 0, 0], sizes = [1, 1, 18, 128], strides = [1, 1, 1, 1]} : vector<1x4x18x128xf32> to vector<1x1x18x128xf32>
    %14 = vector.shape_cast %13 : vector<1x1x18x128xf32> to vector<1x18x128xf32>
    %15 = vector.broadcast %12 : f32 to vector<1x18x128xf32>
    %16 = arith.mulf %14, %15 : vector<1x18x128xf32>
    %17 = arith.addf %11, %16 : vector<1x18x128xf32>
    %c18 = arith.constant 18 : index
    %18 = memref.load %arg2[%c18] : memref<36xf32, #tpu.memory_space<smem>>
    %19 = vector.extract_strided_slice %5 {offsets = [0, 2, 0, 0], sizes = [1, 1, 18, 128], strides = [1, 1, 1, 1]} : vector<1x4x18x128xf32> to vector<1x1x18x128xf32>
    %20 = vector.shape_cast %19 : vector<1x1x18x128xf32> to vector<1x18x128xf32>
    %21 = vector.broadcast %18 : f32 to vector<1x18x128xf32>
    %22 = arith.mulf %20, %21 : vector<1x18x128xf32>
    %23 = arith.addf %17, %22 : vector<1x18x128xf32>
    %c27 = arith.constant 27 : index
    %24 = memref.load %arg2[%c27] : memref<36xf32, #tpu.memory_space<smem>>
    %25 = vector.extract_strided_slice %5 {offsets = [0, 3, 0, 0], sizes = [1, 1, 18, 128], strides = [1, 1, 1, 1]} : vector<1x4x18x128xf32> to vector<1x1x18x128xf32>
    %26 = vector.shape_cast %25 : vector<1x1x18x128xf32> to vector<1x18x128xf32>
    %27 = vector.broadcast %24 : f32 to vector<1x18x128xf32>
    %28 = arith.mulf %26, %27 : vector<1x18x128xf32>
    %29 = arith.addf %23, %28 : vector<1x18x128xf32>
    %c0_16 = arith.constant 0 : index
    %c0_17 = arith.constant 0 : index
    %c0_18 = arith.constant 0 : index
    %c1 = arith.constant 1 : index
    %30 = vector.load %arg5[%c0_16, %c0_17, %c0_18, %c1] : memref<1x4x20x256xf32, #tpu.memory_space<vmem>>, vector<1x4x18x128xf32>
    %c1_19 = arith.constant 1 : index
    %31 = memref.load %arg2[%c1_19] : memref<36xf32, #tpu.memory_space<smem>>
    %32 = vector.extract_strided_slice %30 {offsets = [0, 0, 0, 0], sizes = [1, 1, 18, 128], strides = [1, 1, 1, 1]} : vector<1x4x18x128xf32> to vector<1x1x18x128xf32>
    %33 = vector.shape_cast %32 : vector<1x1x18x128xf32> to vector<1x18x128xf32>
    %34 = vector.broadcast %31 : f32 to vector<1x18x128xf32>
    %35 = arith.mulf %33, %34 : vector<1x18x128xf32>
    %36 = arith.addf %29, %35 : vector<1x18x128xf32>
    %c10 = arith.constant 10 : index
    %37 = memref.load %arg2[%c10] : memref<36xf32, #tpu.memory_space<smem>>
    %38 = vector.extract_strided_slice %30 {offsets = [0, 1, 0, 0], sizes = [1, 1, 18, 128], strides = [1, 1, 1, 1]} : vector<1x4x18x128xf32> to vector<1x1x18x128xf32>
    %39 = vector.shape_cast %38 : vector<1x1x18x128xf32> to vector<1x18x128xf32>
    %40 = vector.broadcast %37 : f32 to vector<1x18x128xf32>
    %41 = arith.mulf %39, %40 : vector<1x18x128xf32>
    %42 = arith.addf %36, %41 : vector<1x18x128xf32>
    %c19 = arith.constant 19 : index
    %43 = memref.load %arg2[%c19] : memref<36xf32, #tpu.memory_space<smem>>
    %44 = vector.extract_strided_slice %30 {offsets = [0, 2, 0, 0], sizes = [1, 1, 18, 128], strides = [1, 1, 1, 1]} : vector<1x4x18x128xf32> to vector<1x1x18x128xf32>
    %45 = vector.shape_cast %44 : vector<1x1x18x128xf32> to vector<1x18x128xf32>
    %46 = vector.broadcast %43 : f32 to vector<1x18x128xf32>
    %47 = arith.mulf %45, %46 : vector<1x18x128xf32>
    %48 = arith.addf %42, %47 : vector<1x18x128xf32>
    %c28 = arith.constant 28 : index
    %49 = memref.load %arg2[%c28] : memref<36xf32, #tpu.memory_space<smem>>
    %50 = vector.extract_strided_slice %30 {offsets = [0, 3, 0, 0], sizes = [1, 1, 18, 128], strides = [1, 1, 1, 1]} : vector<1x4x18x128xf32> to vector<1x1x18x128xf32>
    %51 = vector.shape_cast %50 : vector<1x1x18x128xf32> to vector<1x18x128xf32>
    %52 = vector.broadcast %49 : f32 to vector<1x18x128xf32>
    %53 = arith.mulf %51, %52 : vector<1x18x128xf32>
    %54 = arith.addf %48, %53 : vector<1x18x128xf32>
    %c0_20 = arith.constant 0 : index
    %c0_21 = arith.constant 0 : index
    %c0_22 = arith.constant 0 : index
    %c2_23 = arith.constant 2 : index
    %55 = vector.load %arg5[%c0_20, %c0_21, %c0_22, %c2_23] : memref<1x4x20x256xf32, #tpu.memory_space<vmem>>, vector<1x4x18x128xf32>
    %c2_24 = arith.constant 2 : index
    %56 = memref.load %arg2[%c2_24] : memref<36xf32, #tpu.memory_space<smem>>
    %57 = vector.extract_strided_slice %55 {offsets = [0, 0, 0, 0], sizes = [1, 1, 18, 128], strides = [1, 1, 1, 1]} : vector<1x4x18x128xf32> to vector<1x1x18x128xf32>
    %58 = vector.shape_cast %57 : vector<1x1x18x128xf32> to vector<1x18x128xf32>
    %59 = vector.broadcast %56 : f32 to vector<1x18x128xf32>
    %60 = arith.mulf %58, %59 : vector<1x18x128xf32>
    %61 = arith.addf %54, %60 : vector<1x18x128xf32>
    %c11 = arith.constant 11 : index
    %62 = memref.load %arg2[%c11] : memref<36xf32, #tpu.memory_space<smem>>
    %63 = vector.extract_strided_slice %55 {offsets = [0, 1, 0, 0], sizes = [1, 1, 18, 128], strides = [1, 1, 1, 1]} : vector<1x4x18x128xf32> to vector<1x1x18x128xf32>
    %64 = vector.shape_cast %63 : vector<1x1x18x128xf32> to vector<1x18x128xf32>
    %65 = vector.broadcast %62 : f32 to vector<1x18x128xf32>
    %66 = arith.mulf %64, %65 : vector<1x18x128xf32>
    %67 = arith.addf %61, %66 : vector<1x18x128xf32>
    %c20 = arith.constant 20 : index
    %68 = memref.load %arg2[%c20] : memref<36xf32, #tpu.memory_space<smem>>
    %69 = vector.extract_strided_slice %55 {offsets = [0, 2, 0, 0], sizes = [1, 1, 18, 128], strides = [1, 1, 1, 1]} : vector<1x4x18x128xf32> to vector<1x1x18x128xf32>
    %70 = vector.shape_cast %69 : vector<1x1x18x128xf32> to vector<1x18x128xf32>
    %71 = vector.broadcast %68 : f32 to vector<1x18x128xf32>
    %72 = arith.mulf %70, %71 : vector<1x18x128xf32>
    %73 = arith.addf %67, %72 : vector<1x18x128xf32>
    %c29 = arith.constant 29 : index
    %74 = memref.load %arg2[%c29] : memref<36xf32, #tpu.memory_space<smem>>
    %75 = vector.extract_strided_slice %55 {offsets = [0, 3, 0, 0], sizes = [1, 1, 18, 128], strides = [1, 1, 1, 1]} : vector<1x4x18x128xf32> to vector<1x1x18x128xf32>
    %76 = vector.shape_cast %75 : vector<1x1x18x128xf32> to vector<1x18x128xf32>
    %77 = vector.broadcast %74 : f32 to vector<1x18x128xf32>
    %78 = arith.mulf %76, %77 : vector<1x18x128xf32>
    %79 = arith.addf %73, %78 : vector<1x18x128xf32>
    %c0_25 = arith.constant 0 : index
    %c0_26 = arith.constant 0 : index
    %c1_27 = arith.constant 1 : index
    %c0_28 = arith.constant 0 : index
    %80 = vector.load %arg5[%c0_25, %c0_26, %c1_27, %c0_28] : memref<1x4x20x256xf32, #tpu.memory_space<vmem>>, vector<1x4x18x128xf32>
    %c3 = arith.constant 3 : index
    %81 = memref.load %arg2[%c3] : memref<36xf32, #tpu.memory_space<smem>>
    %82 = vector.extract_strided_slice %80 {offsets = [0, 0, 0, 0], sizes = [1, 1, 18, 128], strides = [1, 1, 1, 1]} : vector<1x4x18x128xf32> to vector<1x1x18x128xf32>
    %83 = vector.shape_cast %82 : vector<1x1x18x128xf32> to vector<1x18x128xf32>
    %84 = vector.broadcast %81 : f32 to vector<1x18x128xf32>
    %85 = arith.mulf %83, %84 : vector<1x18x128xf32>
    %86 = arith.addf %79, %85 : vector<1x18x128xf32>
    %c12 = arith.constant 12 : index
    %87 = memref.load %arg2[%c12] : memref<36xf32, #tpu.memory_space<smem>>
    %88 = vector.extract_strided_slice %80 {offsets = [0, 1, 0, 0], sizes = [1, 1, 18, 128], strides = [1, 1, 1, 1]} : vector<1x4x18x128xf32> to vector<1x1x18x128xf32>
    %89 = vector.shape_cast %88 : vector<1x1x18x128xf32> to vector<1x18x128xf32>
    %90 = vector.broadcast %87 : f32 to vector<1x18x128xf32>
    %91 = arith.mulf %89, %90 : vector<1x18x128xf32>
    %92 = arith.addf %86, %91 : vector<1x18x128xf32>
    %c21 = arith.constant 21 : index
    %93 = memref.load %arg2[%c21] : memref<36xf32, #tpu.memory_space<smem>>
    %94 = vector.extract_strided_slice %80 {offsets = [0, 2, 0, 0], sizes = [1, 1, 18, 128], strides = [1, 1, 1, 1]} : vector<1x4x18x128xf32> to vector<1x1x18x128xf32>
    %95 = vector.shape_cast %94 : vector<1x1x18x128xf32> to vector<1x18x128xf32>
    %96 = vector.broadcast %93 : f32 to vector<1x18x128xf32>
    %97 = arith.mulf %95, %96 : vector<1x18x128xf32>
    %98 = arith.addf %92, %97 : vector<1x18x128xf32>
    %c30 = arith.constant 30 : index
    %99 = memref.load %arg2[%c30] : memref<36xf32, #tpu.memory_space<smem>>
    %100 = vector.extract_strided_slice %80 {offsets = [0, 3, 0, 0], sizes = [1, 1, 18, 128], strides = [1, 1, 1, 1]} : vector<1x4x18x128xf32> to vector<1x1x18x128xf32>
    %101 = vector.shape_cast %100 : vector<1x1x18x128xf32> to vector<1x18x128xf32>
    %102 = vector.broadcast %99 : f32 to vector<1x18x128xf32>
    %103 = arith.mulf %101, %102 : vector<1x18x128xf32>
    %104 = arith.addf %98, %103 : vector<1x18x128xf32>
    %c0_29 = arith.constant 0 : index
    %c0_30 = arith.constant 0 : index
    %c1_31 = arith.constant 1 : index
    %c1_32 = arith.constant 1 : index
    %105 = vector.load %arg5[%c0_29, %c0_30, %c1_31, %c1_32] : memref<1x4x20x256xf32, #tpu.memory_space<vmem>>, vector<1x4x18x128xf32>
    %c4 = arith.constant 4 : index
    %106 = memref.load %arg2[%c4] : memref<36xf32, #tpu.memory_space<smem>>
    %107 = vector.extract_strided_slice %105 {offsets = [0, 0, 0, 0], sizes = [1, 1, 18, 128], strides = [1, 1, 1, 1]} : vector<1x4x18x128xf32> to vector<1x1x18x128xf32>
    %108 = vector.shape_cast %107 : vector<1x1x18x128xf32> to vector<1x18x128xf32>
    %109 = vector.broadcast %106 : f32 to vector<1x18x128xf32>
    %110 = arith.mulf %108, %109 : vector<1x18x128xf32>
    %111 = arith.addf %104, %110 : vector<1x18x128xf32>
    %c13 = arith.constant 13 : index
    %112 = memref.load %arg2[%c13] : memref<36xf32, #tpu.memory_space<smem>>
    %113 = vector.extract_strided_slice %105 {offsets = [0, 1, 0, 0], sizes = [1, 1, 18, 128], strides = [1, 1, 1, 1]} : vector<1x4x18x128xf32> to vector<1x1x18x128xf32>
    %114 = vector.shape_cast %113 : vector<1x1x18x128xf32> to vector<1x18x128xf32>
    %115 = vector.broadcast %112 : f32 to vector<1x18x128xf32>
    %116 = arith.mulf %114, %115 : vector<1x18x128xf32>
    %117 = arith.addf %111, %116 : vector<1x18x128xf32>
    %c22 = arith.constant 22 : index
    %118 = memref.load %arg2[%c22] : memref<36xf32, #tpu.memory_space<smem>>
    %119 = vector.extract_strided_slice %105 {offsets = [0, 2, 0, 0], sizes = [1, 1, 18, 128], strides = [1, 1, 1, 1]} : vector<1x4x18x128xf32> to vector<1x1x18x128xf32>
    %120 = vector.shape_cast %119 : vector<1x1x18x128xf32> to vector<1x18x128xf32>
    %121 = vector.broadcast %118 : f32 to vector<1x18x128xf32>
    %122 = arith.mulf %120, %121 : vector<1x18x128xf32>
    %123 = arith.addf %117, %122 : vector<1x18x128xf32>
    %c31 = arith.constant 31 : index
    %124 = memref.load %arg2[%c31] : memref<36xf32, #tpu.memory_space<smem>>
    %125 = vector.extract_strided_slice %105 {offsets = [0, 3, 0, 0], sizes = [1, 1, 18, 128], strides = [1, 1, 1, 1]} : vector<1x4x18x128xf32> to vector<1x1x18x128xf32>
    %126 = vector.shape_cast %125 : vector<1x1x18x128xf32> to vector<1x18x128xf32>
    %127 = vector.broadcast %124 : f32 to vector<1x18x128xf32>
    %128 = arith.mulf %126, %127 : vector<1x18x128xf32>
    %129 = arith.addf %123, %128 : vector<1x18x128xf32>
    %c0_33 = arith.constant 0 : index
    %c0_34 = arith.constant 0 : index
    %c1_35 = arith.constant 1 : index
    %c2_36 = arith.constant 2 : index
    %130 = vector.load %arg5[%c0_33, %c0_34, %c1_35, %c2_36] : memref<1x4x20x256xf32, #tpu.memory_space<vmem>>, vector<1x4x18x128xf32>
    %c5 = arith.constant 5 : index
    %131 = memref.load %arg2[%c5] : memref<36xf32, #tpu.memory_space<smem>>
    %132 = vector.extract_strided_slice %130 {offsets = [0, 0, 0, 0], sizes = [1, 1, 18, 128], strides = [1, 1, 1, 1]} : vector<1x4x18x128xf32> to vector<1x1x18x128xf32>
    %133 = vector.shape_cast %132 : vector<1x1x18x128xf32> to vector<1x18x128xf32>
    %134 = vector.broadcast %131 : f32 to vector<1x18x128xf32>
    %135 = arith.mulf %133, %134 : vector<1x18x128xf32>
    %136 = arith.addf %129, %135 : vector<1x18x128xf32>
    %c14 = arith.constant 14 : index
    %137 = memref.load %arg2[%c14] : memref<36xf32, #tpu.memory_space<smem>>
    %138 = vector.extract_strided_slice %130 {offsets = [0, 1, 0, 0], sizes = [1, 1, 18, 128], strides = [1, 1, 1, 1]} : vector<1x4x18x128xf32> to vector<1x1x18x128xf32>
    %139 = vector.shape_cast %138 : vector<1x1x18x128xf32> to vector<1x18x128xf32>
    %140 = vector.broadcast %137 : f32 to vector<1x18x128xf32>
    %141 = arith.mulf %139, %140 : vector<1x18x128xf32>
    %142 = arith.addf %136, %141 : vector<1x18x128xf32>
    %c23 = arith.constant 23 : index
    %143 = memref.load %arg2[%c23] : memref<36xf32, #tpu.memory_space<smem>>
    %144 = vector.extract_strided_slice %130 {offsets = [0, 2, 0, 0], sizes = [1, 1, 18, 128], strides = [1, 1, 1, 1]} : vector<1x4x18x128xf32> to vector<1x1x18x128xf32>
    %145 = vector.shape_cast %144 : vector<1x1x18x128xf32> to vector<1x18x128xf32>
    %146 = vector.broadcast %143 : f32 to vector<1x18x128xf32>
    %147 = arith.mulf %145, %146 : vector<1x18x128xf32>
    %148 = arith.addf %142, %147 : vector<1x18x128xf32>
    %c32 = arith.constant 32 : index
    %149 = memref.load %arg2[%c32] : memref<36xf32, #tpu.memory_space<smem>>
    %150 = vector.extract_strided_slice %130 {offsets = [0, 3, 0, 0], sizes = [1, 1, 18, 128], strides = [1, 1, 1, 1]} : vector<1x4x18x128xf32> to vector<1x1x18x128xf32>
    %151 = vector.shape_cast %150 : vector<1x1x18x128xf32> to vector<1x18x128xf32>
    %152 = vector.broadcast %149 : f32 to vector<1x18x128xf32>
    %153 = arith.mulf %151, %152 : vector<1x18x128xf32>
    %154 = arith.addf %148, %153 : vector<1x18x128xf32>
    %c0_37 = arith.constant 0 : index
    %c0_38 = arith.constant 0 : index
    %c2_39 = arith.constant 2 : index
    %c0_40 = arith.constant 0 : index
    %155 = vector.load %arg5[%c0_37, %c0_38, %c2_39, %c0_40] : memref<1x4x20x256xf32, #tpu.memory_space<vmem>>, vector<1x4x18x128xf32>
    %c6 = arith.constant 6 : index
    %156 = memref.load %arg2[%c6] : memref<36xf32, #tpu.memory_space<smem>>
    %157 = vector.extract_strided_slice %155 {offsets = [0, 0, 0, 0], sizes = [1, 1, 18, 128], strides = [1, 1, 1, 1]} : vector<1x4x18x128xf32> to vector<1x1x18x128xf32>
    %158 = vector.shape_cast %157 : vector<1x1x18x128xf32> to vector<1x18x128xf32>
    %159 = vector.broadcast %156 : f32 to vector<1x18x128xf32>
    %160 = arith.mulf %158, %159 : vector<1x18x128xf32>
    %161 = arith.addf %154, %160 : vector<1x18x128xf32>
    %c15 = arith.constant 15 : index
    %162 = memref.load %arg2[%c15] : memref<36xf32, #tpu.memory_space<smem>>
    %163 = vector.extract_strided_slice %155 {offsets = [0, 1, 0, 0], sizes = [1, 1, 18, 128], strides = [1, 1, 1, 1]} : vector<1x4x18x128xf32> to vector<1x1x18x128xf32>
    %164 = vector.shape_cast %163 : vector<1x1x18x128xf32> to vector<1x18x128xf32>
    %165 = vector.broadcast %162 : f32 to vector<1x18x128xf32>
    %166 = arith.mulf %164, %165 : vector<1x18x128xf32>
    %167 = arith.addf %161, %166 : vector<1x18x128xf32>
    %c24 = arith.constant 24 : index
    %168 = memref.load %arg2[%c24] : memref<36xf32, #tpu.memory_space<smem>>
    %169 = vector.extract_strided_slice %155 {offsets = [0, 2, 0, 0], sizes = [1, 1, 18, 128], strides = [1, 1, 1, 1]} : vector<1x4x18x128xf32> to vector<1x1x18x128xf32>
    %170 = vector.shape_cast %169 : vector<1x1x18x128xf32> to vector<1x18x128xf32>
    %171 = vector.broadcast %168 : f32 to vector<1x18x128xf32>
    %172 = arith.mulf %170, %171 : vector<1x18x128xf32>
    %173 = arith.addf %167, %172 : vector<1x18x128xf32>
    %c33 = arith.constant 33 : index
    %174 = memref.load %arg2[%c33] : memref<36xf32, #tpu.memory_space<smem>>
    %175 = vector.extract_strided_slice %155 {offsets = [0, 3, 0, 0], sizes = [1, 1, 18, 128], strides = [1, 1, 1, 1]} : vector<1x4x18x128xf32> to vector<1x1x18x128xf32>
    %176 = vector.shape_cast %175 : vector<1x1x18x128xf32> to vector<1x18x128xf32>
    %177 = vector.broadcast %174 : f32 to vector<1x18x128xf32>
    %178 = arith.mulf %176, %177 : vector<1x18x128xf32>
    %179 = arith.addf %173, %178 : vector<1x18x128xf32>
    %c0_41 = arith.constant 0 : index
    %c0_42 = arith.constant 0 : index
    %c2_43 = arith.constant 2 : index
    %c1_44 = arith.constant 1 : index
    %180 = vector.load %arg5[%c0_41, %c0_42, %c2_43, %c1_44] : memref<1x4x20x256xf32, #tpu.memory_space<vmem>>, vector<1x4x18x128xf32>
    %c7 = arith.constant 7 : index
    %181 = memref.load %arg2[%c7] : memref<36xf32, #tpu.memory_space<smem>>
    %182 = vector.extract_strided_slice %180 {offsets = [0, 0, 0, 0], sizes = [1, 1, 18, 128], strides = [1, 1, 1, 1]} : vector<1x4x18x128xf32> to vector<1x1x18x128xf32>
    %183 = vector.shape_cast %182 : vector<1x1x18x128xf32> to vector<1x18x128xf32>
    %184 = vector.broadcast %181 : f32 to vector<1x18x128xf32>
    %185 = arith.mulf %183, %184 : vector<1x18x128xf32>
    %186 = arith.addf %179, %185 : vector<1x18x128xf32>
    %c16 = arith.constant 16 : index
    %187 = memref.load %arg2[%c16] : memref<36xf32, #tpu.memory_space<smem>>
    %188 = vector.extract_strided_slice %180 {offsets = [0, 1, 0, 0], sizes = [1, 1, 18, 128], strides = [1, 1, 1, 1]} : vector<1x4x18x128xf32> to vector<1x1x18x128xf32>
    %189 = vector.shape_cast %188 : vector<1x1x18x128xf32> to vector<1x18x128xf32>
    %190 = vector.broadcast %187 : f32 to vector<1x18x128xf32>
    %191 = arith.mulf %189, %190 : vector<1x18x128xf32>
    %192 = arith.addf %186, %191 : vector<1x18x128xf32>
    %c25 = arith.constant 25 : index
    %193 = memref.load %arg2[%c25] : memref<36xf32, #tpu.memory_space<smem>>
    %194 = vector.extract_strided_slice %180 {offsets = [0, 2, 0, 0], sizes = [1, 1, 18, 128], strides = [1, 1, 1, 1]} : vector<1x4x18x128xf32> to vector<1x1x18x128xf32>
    %195 = vector.shape_cast %194 : vector<1x1x18x128xf32> to vector<1x18x128xf32>
    %196 = vector.broadcast %193 : f32 to vector<1x18x128xf32>
    %197 = arith.mulf %195, %196 : vector<1x18x128xf32>
    %198 = arith.addf %192, %197 : vector<1x18x128xf32>
    %c34 = arith.constant 34 : index
    %199 = memref.load %arg2[%c34] : memref<36xf32, #tpu.memory_space<smem>>
    %200 = vector.extract_strided_slice %180 {offsets = [0, 3, 0, 0], sizes = [1, 1, 18, 128], strides = [1, 1, 1, 1]} : vector<1x4x18x128xf32> to vector<1x1x18x128xf32>
    %201 = vector.shape_cast %200 : vector<1x1x18x128xf32> to vector<1x18x128xf32>
    %202 = vector.broadcast %199 : f32 to vector<1x18x128xf32>
    %203 = arith.mulf %201, %202 : vector<1x18x128xf32>
    %204 = arith.addf %198, %203 : vector<1x18x128xf32>
    %c0_45 = arith.constant 0 : index
    %c0_46 = arith.constant 0 : index
    %c2_47 = arith.constant 2 : index
    %c2_48 = arith.constant 2 : index
    %205 = vector.load %arg5[%c0_45, %c0_46, %c2_47, %c2_48] : memref<1x4x20x256xf32, #tpu.memory_space<vmem>>, vector<1x4x18x128xf32>
    %c8 = arith.constant 8 : index
    %206 = memref.load %arg2[%c8] : memref<36xf32, #tpu.memory_space<smem>>
    %207 = vector.extract_strided_slice %205 {offsets = [0, 0, 0, 0], sizes = [1, 1, 18, 128], strides = [1, 1, 1, 1]} : vector<1x4x18x128xf32> to vector<1x1x18x128xf32>
    %208 = vector.shape_cast %207 : vector<1x1x18x128xf32> to vector<1x18x128xf32>
    %209 = vector.broadcast %206 : f32 to vector<1x18x128xf32>
    %210 = arith.mulf %208, %209 : vector<1x18x128xf32>
    %211 = arith.addf %204, %210 : vector<1x18x128xf32>
    %c17 = arith.constant 17 : index
    %212 = memref.load %arg2[%c17] : memref<36xf32, #tpu.memory_space<smem>>
    %213 = vector.extract_strided_slice %205 {offsets = [0, 1, 0, 0], sizes = [1, 1, 18, 128], strides = [1, 1, 1, 1]} : vector<1x4x18x128xf32> to vector<1x1x18x128xf32>
    %214 = vector.shape_cast %213 : vector<1x1x18x128xf32> to vector<1x18x128xf32>
    %215 = vector.broadcast %212 : f32 to vector<1x18x128xf32>
    %216 = arith.mulf %214, %215 : vector<1x18x128xf32>
    %217 = arith.addf %211, %216 : vector<1x18x128xf32>
    %c26 = arith.constant 26 : index
    %218 = memref.load %arg2[%c26] : memref<36xf32, #tpu.memory_space<smem>>
    %219 = vector.extract_strided_slice %205 {offsets = [0, 2, 0, 0], sizes = [1, 1, 18, 128], strides = [1, 1, 1, 1]} : vector<1x4x18x128xf32> to vector<1x1x18x128xf32>
    %220 = vector.shape_cast %219 : vector<1x1x18x128xf32> to vector<1x18x128xf32>
    %221 = vector.broadcast %218 : f32 to vector<1x18x128xf32>
    %222 = arith.mulf %220, %221 : vector<1x18x128xf32>
    %223 = arith.addf %217, %222 : vector<1x18x128xf32>
    %c35 = arith.constant 35 : index
    %224 = memref.load %arg2[%c35] : memref<36xf32, #tpu.memory_space<smem>>
    %225 = vector.extract_strided_slice %205 {offsets = [0, 3, 0, 0], sizes = [1, 1, 18, 128], strides = [1, 1, 1, 1]} : vector<1x4x18x128xf32> to vector<1x1x18x128xf32>
    %226 = vector.shape_cast %225 : vector<1x1x18x128xf32> to vector<1x18x128xf32>
    %227 = vector.broadcast %224 : f32 to vector<1x18x128xf32>
    %228 = arith.mulf %226, %227 : vector<1x18x128xf32>
    %229 = arith.addf %223, %228 : vector<1x18x128xf32>
    %c0_49 = arith.constant 0 : index
    %230 = memref.load %arg3[%c0_49] : memref<1xf32, #tpu.memory_space<smem>>
    %231 = vector.broadcast %230 : f32 to vector<1x18x128xf32>
    %232 = arith.addf %229, %231 : vector<1x18x128xf32>
    %c0_50 = arith.constant 0 : index
    %c0_51 = arith.constant 0 : index
    %c0_52 = arith.constant 0 : index
    %233 = vector.load %arg4[%c0_50, %c0_51, %c0_52] : memref<1x18x128xf32, #tpu.memory_space<vmem>>, vector<1x18x128xf32>
    tpu.vector_store %arg4[%c0_50, %c0_51, %c0_52], %232 {strides = array<i32>} : memref<1x18x128xf32, #tpu.memory_space<vmem>>, vector<1x18x128xf32>,
    return
  }
  func.func @transform_0(%arg0: i32) -> (i32, i32, i32, i32) {
    %c0_i32 = arith.constant 0 : i32
    %c0_i32_0 = arith.constant 0 : i32
    %c0_i32_1 = arith.constant 0 : i32
    %c0_i32_2 = arith.constant 0 : i32
    return %arg0, %c0_i32, %c0_i32_0, %c0_i32_1 : i32, i32, i32, i32
  }
  func.func @transform_1(%arg0: i32) -> i32 {
    %c0_i32 = arith.constant 0 : i32
    %c0_i32_0 = arith.constant 0 : i32
    return %c0_i32 : i32
  }
  func.func @transform_2(%arg0: i32) -> i32 {
    %c0_i32 = arith.constant 0 : i32
    %c0_i32_0 = arith.constant 0 : i32
    return %c0_i32 : i32
  }
  func.func @transform_3(%arg0: i32) -> (i32, i32, i32) {
    %c0_i32 = arith.constant 0 : i32
    %c0_i32_0 = arith.constant 0 : i32
    %c0_i32_1 = arith.constant 0 : i32
    return %arg0, %c0_i32, %c0_i32_0 : i32, i32, i32
  }
}

</mosaic_0001>

<bundles_post_ra>
// kernel: tpu_custom_call.1
= control target key start
LH: loop header
LB: loop body
LE: loop exit
PB: predicated region body
PF: predicated region fallthrough
CT: control target
= control target key end

     0   :  { %s3180_s0 = inlined_call_operand.hbm [shape: f32[2,4,16,16], index: 0, kind: input, shape index: {}]   ;;  %s3181_s1 = inlined_call_operand.vmem [shape: f32[36], index: 1, kind: input, shape index: {}]   ;;  %s3182_s2 = inlined_call_operand.<no memory space> [shape: f32[1], index: 2, kind: input, shape index: {}]   ;;  %s3183_s3 = inlined_call_operand.vmem [shape: f32[2,18,128], index: 3, kind: output, shape index: {}]  }
   0x1   :  { %8 = sst [smem:[#allocation3]] %s3182_s2 }
   0x2   :  { %9 = vsyncpa [#allocation5], 0 }
   0x3   :  { %11 = vsyncpa [#allocation5 + $0x1], 0 }
   0x4   :  { %12 = vsyncpa [#allocation6], 0  ;;  %s1888_s14 = smov 0   ;;  %s1890_s15 = smov 0  }
   0x5   :  { %s1892_s16 = smov 0   ;;  %s1894_s17 = smov 0  }
   0x6 LB: > { %s1907_s2 = sadd.s32 4294967295, %s1855_s17   ;;  %s1910_s18 = sadd.s32 1, %s1855_s17   ;;  %s1855_s17 = sphi %s1894_s17, %s3335_s17   ;;  %s1851_s16 = sphi %s1892_s16, %s3334_s16   ;;  %s1847_s15 = sphi %s1890_s15, %s3333_s15   ;;  %s1843_s14 = sphi %s1888_s14, %s3332_s14  }
   0x7   : > { %s22_s19 = ssub.s32 %s1855_s17, %s1910_s18  ;;  %s25_s20 = sadd.s32 1, %s1851_s16 }
   0x8   : > { %p23_p0 = scmp.eq.s32.totalorder %s22_s19, 0  ;;  %p32_p1 = scmp.ne.s32.totalorder %s1851_s16, %s1847_s15 }
   0x9   : > { %p33_p2 = scmp.eq.s32.totalorder %s1855_s17, 0  ;;  %p38_p3 = scmp.ne.s32.totalorder %s1847_s15, %s1843_s14 }
   0xa   : > { %s1920_s21 = scalar_select %p23_p0, %s1851_s16, %s25_s20  }
   0xb   : > { %p34_p4 = por %p33_p2, %p32_p1  ;;  %p3186_p5 = scmp.eq.s32.totalorder %s1907_s2, 0 }
   0xc   : > { %p1658_p6 = scmp.ge.s32.totalorder %s1855_s17, 1  ;;  %p117_p7 = scmp.lt.s32.totalorder %s1855_s17, 3 }
   0xd   : > { %p1927_p8 = por %p3186_p5, %p38_p3  ;;  %s130_s26 = sshll.u32 %s3181_s1, 4  ;;  %s131_s26 = int_to_ptr.vmem [resolvable:$true] %s130_s26 }
   0xe   : > { %p1931_p9 = pnand %p1658_p6, %p117_p7  ;;  %p1722_p11 = scmp.lt.s32.totalorder %s1855_s17, 2 }
   0xf   : > { %s3222_s22 = scalar_select %p1927_p8, 1, 0 }
  0x10   : > { %s3223_s23 = scalar_select %p1931_p9, 1, 0 }
  0x11   : > { %p1713_p10 = pneg %p1931_p9  ;;  %s144_s27 = sand.u32 1, %s1851_s16  }
  0x12   : > { %p1948_p13 = pnand %p1722_p11, %p34_p4  ;;  %s1661_s30 = sshll.u32 %s144_s27, 6 }
  0x13   : > { %p1944_p12 = pnand %p1713_p10, %p3186_p5  ;;  %s1774_s4 = scalar_lea.vmem %s131_s26, 16 }
  0x14   : > { %p1775_p0 = scmp.ne.s32.totalorder %s131_s26, %s1774_s4  ;;  %p1782_p6 = scmp.lt.s32.totalorder %s131_s26, %s131_s26 }
  0x15   : > { %p1776_p1 = pneg %p1944_p12  ;;  %p1783_p7 = scmp.lt.s32.totalorder %s1774_s4, %s1774_s4 }
  0x17   : > { %p1777_p2 = pnand %p1776_p1, %p1775_p0  ;;  %p1784_p8 = por %p1783_p7, %p1782_p6 }
  0x19   : > { %p1778_p3 = pneg %p1777_p2 }
  0x1b   : > { %p1785_p9 = pnand %p1784_p8, %p1778_p3 }
  0x1d   : > { %1788 = shalt.err (!%p1785_p9)
}
  0x1e   : > { %s1857_s5 = smov [#allocation7]   ;;  %s1705_s6 = sshll.u32 %s1855_s17, 10 }
  0x1f   : > { %1716 = dma.vmem_to_smem (!%p1944_p12), %s131_s26, 16, %s1857_s5, [#allocation6]  }
  0x20   : > { %s1960_s9 = scalar_lea.hbm %s3180_s0, %s1705_s6  ;;  %s148_s10 = scalar_lea.vmem [#allocation4], %s1661_s30 }
  0x21   : > { %s155_s11 = sshll.u32 %s148_s10, 4  ;;  %s1964_s12 = scalar_lea.sflag [#allocation5], %s144_s27  ;;  %s1962_s11 = int_to_ptr.vmem [resolvable:$true] %s155_s11 }
  0x22   : > { %s1789_s13 = scalar_lea.hbm %s1960_s9, 1024  ;;  %p1791_p8 = pneg %p1948_p13 }
  0x23   : > { %p1790_p4 = scmp.ne.s32.totalorder %s1960_s9, %s1789_s13  ;;  %s1794_s19 = scalar_lea.hbm %s3180_s0, 2048 }
  0x24   : > { %p1795_p11 = scmp.lt.s32.totalorder %s1960_s9, %s3180_s0  ;;  %p1796_p12 = scmp.lt.s32.totalorder %s1794_s19, %s1789_s13 }
  0x25   : > { %p1792_p9 = pnand %p1791_p8, %p1790_p4 }
  0x26   : > { %p1797_p0 = por %p1796_p12, %p1795_p11 }
  0x27   : > { %p1793_p10 = pneg %p1792_p9 }
  0x29   : > { %p1798_p1 = pnand %p1797_p0, %p1793_p10 }
  0x2b   : > { %1801 = shalt.err (!%p1798_p1)
}
  0x2c   : > { %s1802_s25 = scalar_lea.vmem %s1962_s11, 1024  ;;  %s1858_s26 = smov [#allocation4]  }
  0x2d   : > { %p1803_p2 = scmp.ne.s32.totalorder %s1962_s11, %s1802_s25  ;;  %s1807_s27 = sshll.u32 %s1858_s26, 4  ;;  %s1808_s27 = int_to_ptr.vmem [resolvable:$false] %s1807_s27 }
  0x2e   : > { %s1809_s28 = scalar_lea.vmem %s1808_s27, 2048  ;;  %p1810_p7 = scmp.lt.s32.totalorder %s1962_s11, %s1808_s27 }
  0x2f   : > { %p1805_p3 = pnand %p1803_p2, %p1791_p8  ;;  %p1811_p4 = scmp.lt.s32.totalorder %s1809_s28, %s1802_s25 }
  0x31   : > { %p1806_p6 = pneg %p1805_p3  ;;  %p1812_p9 = por %p1811_p4, %p1810_p7 }
  0x33   : > { %p1813_p5 = pnand %p1812_p9, %p1806_p6 }
  0x35   : > { %1816 = shalt.err (!%p1813_p5)
}
  0x36   : > { %s1859_s30 = smov 128   ;;  %s1860_s4 = smov 8  }
  0x37   : > { %1720 = dma.hbm_to_vmem [thread:$0]  (!%p1948_p13), %s1960_s9, 1024, %s1962_s11, %s1964_s12, %s1859_s30, %s1859_s30, %s1860_s4  }
  0x38   : > { %p3226_p8 = scmp.ne.s32.totalorder %s3223_s23, 0 }
  0x3a   : > { %167 = sbr.rel (%p3226_p8) target bundleno = 607 (0x25f), region = 32 }
  0x3f   : > { %s169_s5 = sand.u32 1, %s1847_s15   ;;  %p3227_p10 = scmp.ne.s32.totalorder %s3222_s22, 0 }
  0x40   : > { %s1665_s6 = sshll.u32 %s169_s5, 6  ;;  %s170_s7 = scalar_lea.sflag [#allocation5], %s169_s5 }
  0x41   : > { %s1988_s8 = scalar_lea.vmem [#allocation4], %s1665_s6 }
  0x42   : > { %1834 = dma.done.wait (%p3227_p10), %s170_s7, 1024  }
  0x43   : > { %1836 = vsyncadd (%p3227_p10), %s170_s7, 4294966272  ;;  %p3228_p5 = scmp.eq.s32.totalorder %s1907_s2, 0 }
  0x45   : > { %1838 = dma.done.wait (%p3228_p5), [#allocation6], 16   ;;  %p3229_p13 = pmov %p3228_p5 }
  0x47   : > { %1840 = vsyncadd (%p3229_p13), [#allocation6], 4294967280 }
  0x48   : > { %182 = sfence }
  0x49   : > { %v219_v0 = vld [vmem:[%s1988_s8 + $0x8] sm:$0xff]  ;;  %v218_v1 = vld [vmem:[%s1988_s8] sm:$0xff]  ;;  %v220_v2 = vld [vmem:[%s1988_s8 + $0x10] sm:$0xff]  ;;  %vm234_vm0 = vcmask 1041408   ;;  %s1861_s22 = smov 2   ;;  %v1862_v11 = vmov 0.0  }
  0x4a   : > { %v236_v3 = vrot.slane %v219_v0, 6  ;;  %v235_v4 = vrot.slane %v218_v1, 6  ;;  %v221_v5 = vld [vmem:[%s1988_s8 + $0x18] sm:$0xff]  ;;  %v238_v6 = vrot.slane %v220_v2, 6  ;;  %v222_v9 = vld [vmem:[%s1988_s8 + $0x20] sm:$0xff]  ;;  %v223_v10 = vld [vmem:[%s1988_s8 + $0x28] sm:$0xff] }
  0x4b   : > { %v239_v8 = vrot.slane %v221_v5, 6  ;;  %208 = vst [vmem:[#allocation2 + $0x20] sm:$0xf] %v1862_v11  ;;  %206 = vst [vmem:[#allocation2] sm:$0xff] %v1862_v11  ;;  %v241_v13 = vrot.slane %v222_v9, 6  ;;  %v242_v14 = vrot.slane %v223_v10, 6 }
  0x4c   : > { %251 = vrot.lane.b32.xlu1 %v236_v3, %s1861_s22  ;;  %247 = vrot.lane.b32.xlu0 %v235_v4, %s1861_s22  ;;  %v237_v7 = vsel %vm234_vm0, %v235_v4, %v236_v3  ;;  %207 = vst [vmem:[#allocation2 + $0x10] sm:$0xff] %v1862_v11  ;;  %209 = vst [vmem:[#allocation2 + $0x30] sm:$0xff] %v1862_v11  ;;  %v224_v16 = vld [vmem:[%s1988_s8 + $0x30] sm:$0xff]  ;;  %s1671_s23 = sld [smem:[#allocation7 + $0x1]]  ;;  %v225_v17 = vld [vmem:[%s1988_s8 + $0x38] sm:$0xff]  ;;  %s1863_s9 = smov 127  }
  0x4d   : > { %210 = vst [vmem:[#allocation2 + $0x40] sm:$0xff] %v1862_v11  ;;  %211 = vst [vmem:[#allocation2 + $0x50] sm:$0xf] %v1862_v11  ;;  %v240_v12 = vsel %vm234_vm0, %v238_v6, %v239_v8  ;;  %v243_v15 = vsel %vm234_vm0, %v241_v13, %v242_v14  ;;  %v244_v18 = vrot.slane %v224_v16, 6  ;;  %v245_v19 = vrot.slane %v225_v17, 6  ;;  %v343_v21 = vld [vmem:[#allocation2 + $0x8] sm:$0xff] }
  0x4e   : > { %212 = vst [vmem:[#allocation2 + $0x60] sm:$0xff] %v1862_v11  ;;  %213 = vst [vmem:[#allocation2 + $0x70] sm:$0xff] %v1862_v11  ;;  %v2025_v24 = vld [vmem:[#allocation2 + $0x18] sm:$0xff]  ;;  %s1672_s29 = sld [smem:[#allocation7 + $0xa]]  ;;  %v347_v26 = vld [vmem:[#allocation2 + $0x28] sm:$0x3] }
  0x4f   : > { %214 = vst [vmem:[#allocation2 + $0x80] sm:$0xf] %v1862_v11  ;;  %215 = vst [vmem:[#allocation2 + $0x90] sm:$0xff] %v1862_v11  ;;  %v246_v20 = vsel %vm234_vm0, %v244_v18, %v245_v19  ;;  %v349_v28 = vld [vmem:[#allocation2 + $0x38] sm:$0xff]  ;;  %v2036_v31 = vld [vmem:[#allocation2 + $0x48] sm:$0xff]  ;;  %s1673_s10 = sld [smem:[#allocation7 + $0x13]] }
  0x50   : > { %216 = vst [vmem:[#allocation2 + $0xa0] sm:$0xff] %v1862_v11  ;;  %217 = vst [vmem:[#allocation2 + $0xb0] sm:$0xf] %v1862_v11  ;;  %253 = vrot.lane.b32.xlu1 %v238_v6, %s1861_s22  ;;  %249 = vrot.lane.b32.xlu0 %v237_v7, %s1861_s22  ;;  %v353_v33 = vld [vmem:[#allocation2 + $0x58] sm:$0x3]  ;;  %v355_v35 = vld [vmem:[#allocation2 + $0x68] sm:$0xff] }
  0x51   : > { %v2047_v38 = vld [vmem:[#allocation2 + $0x78] sm:$0xff]  ;;  %s1674_s11 = sld [smem:[#allocation7 + $0x1c]]  ;;  %v359_v40 = vld [vmem:[#allocation2 + $0x88] sm:$0x3]  ;;  %s1864_s14 = smov 126   ;;  %vm287_vm1 = vcmask 140304  }
  0x52   : > { %v2020_v22 = vstv %s1671_s23  ;;  %v361_v42 = vld [vmem:[#allocation2 + $0x98] sm:$0xff]  ;;  %v2058_v45 = vld [vmem:[#allocation2 + $0xa8] sm:$0xff]  ;;  %s1675_s12 = sld [smem:[#allocation7 + $0x2]]  ;;  %vm283_vm2 = vcmask 146450   ;;  %vm285_vm3 = vcmask 146448   ;;  %vm664_vm4 = vcmask 1046528  }
  0x53   : > { %v369_v23 = vmul.f32 %v2020_v22, %v343_v21  ;;  %v371_v25 = vmul.f32 %v2020_v22, %v2025_v24  ;;  %v373_v27 = vmul.f32 %v2020_v22, %v347_v26  ;;  %v365_v47 = vld [vmem:[#allocation2 + $0xb8] sm:$0x3]  ;;  %s1676_s13 = sld [smem:[#allocation7 + $0xb]]  ;;  %v2096_v63 = vld [vmem:[#allocation2 + $0x8] sm:$0xfe]  ;;  %vm1125_vm5 = vcmask 1045504  }
  0x54   : > { %257 = vrot.lane.b32.xlu1 %v239_v8, %s1861_s22  ;;  %255 = vrot.lane.b32.xlu0 %v240_v12, %s1861_s22  ;;  %v2032_v29 = vstv %s1672_s29  ;;  %s1677_s17 = sld [smem:[#allocation7 + $0x14]]  ;;  %v2107_v4 = vld [vmem:[#allocation2 + $0x28] sm:$0x7]  ;;  %vm392_vm6 = vcmask 1039360   ;;  %vm533_vm7 = vcmask 1031168   ;;  %p201_p11 = scmp.lt.s32.totalorder %s1907_s2, 1 }
  0x55   : > { %v405_v30 = vmul.f32 %v2032_v29, %v349_v28  ;;  %v407_v32 = vmul.f32 %v2032_v29, %v2036_v31  ;;  %v409_v34 = vmul.f32 %v2032_v29, %v353_v33  ;;  %v2043_v36 = vstv %s1673_s10  ;;  %s1678_s19 = sld [smem:[#allocation7 + $0x1d]] }
  0x56   : > { %v440_v37 = vmul.f32 %v2043_v36, %v355_v35  ;;  %v442_v39 = vmul.f32 %v2043_v36, %v2047_v38  ;;  %v444_v41 = vmul.f32 %v2043_v36, %v359_v40  ;;  %s1683_s20 = sld [smem:[#allocation7 + $0x4]]  ;;  %s3337_s2 = smov (!%p201_p11, %s1907_s2), 1 }
  0x57   : > { %v2054_v43 = vstv %s1674_s11  ;;  %s1684_s24 = sld [smem:[#allocation7 + $0xd]] }
  0x58   : > { %261 = vrot.lane.b32.xlu1 %v243_v15, %s1861_s22  ;;  %259 = vrot.lane.b32.xlu0 %v241_v13, %s1861_s22  ;;  %v475_v44 = vmul.f32 %v2054_v43, %v361_v42  ;;  %v477_v46 = vmul.f32 %v2054_v43, %v2058_v45  ;;  %v479_v48 = vmul.f32 %v2054_v43, %v365_v47  ;;  %v2065_v49 = vstv %s1675_s12  ;;  %s310_s25 = sld [smem:[#allocation7]]  ;;  %v2117_v15 = vld [vmem:[#allocation2 + $0x38] sm:$0xfe] }
  0x59   : > { %v510_v50 = vmul.f32 %v2065_v49, %v343_v21  ;;  %v512_v51 = vmul.f32 %v2065_v49, %v2025_v24  ;;  %v514_v52 = vmul.f32 %v2065_v49, %v347_v26  ;;  %v2074_v53 = vstv %s1676_s13  ;;  %s1668_s26 = sld [smem:[#allocation7 + $0x9]]  ;;  %v2137_v26 = vld [vmem:[#allocation2 + $0x58] sm:$0x7] }
  0x5a   : > { %v546_v54 = vmul.f32 %v2074_v53, %v349_v28  ;;  %v548_v55 = vmul.f32 %v2074_v53, %v2036_v31  ;;  %v550_v56 = vmul.f32 %v2074_v53, %v353_v33  ;;  %v2083_v57 = vstv %s1677_s17  ;;  %s2122_s27 = sld [smem:[#allocation7 + $0x5]] }
  0x5b   : > { %v581_v58 = vmul.f32 %v2083_v57, %v355_v35  ;;  %v583_v59 = vmul.f32 %v2083_v57, %v2047_v38  ;;  %v585_v60 = vmul.f32 %v2083_v57, %v359_v40  ;;  %v2092_v61 = vstv %s1678_s19  ;;  %s2131_s28 = sld [smem:[#allocation7 + $0x12]] }
  0x5c   : > { %265 = vrot.lane.b32.xlu1 %v244_v18, %s1861_s22  ;;  %263 = vrot.lane.b32.xlu0 %v242_v14, %s1861_s22  ;;  %v616_v62 = vmul.f32 %v2092_v61, %v361_v42  ;;  %v618_v0 = vmul.f32 %v2092_v61, %v2058_v45  ;;  %v2101_v1 = vstv %s1683_s20  ;;  %v620_v5 = vmul.f32 %v2092_v61, %v365_v47  ;;  %s2143_s30 = sld [smem:[#allocation7 + $0xe]] }
  0x5d   : > { %v752_v2 = vmul.f32 %v2101_v1, %v2096_v63  ;;  %v754_v3 = vmul.f32 %v2101_v1, %v2025_v24  ;;  %v756_v8 = vmul.f32 %v2101_v1, %v2107_v4  ;;  %v2124_v16 = vstv %s1684_s24  ;;  %s2150_s4 = sld [smem:[#allocation7 + $0x16]] }
  0x5e   : > { %v797_v18 = vmul.f32 %v2124_v16, %v2117_v15  ;;  %v2146_v28 = vstv %s310_s25  ;;  %v2157_v35 = vmul.f32 %v2124_v16, %v2137_v26  ;;  %s2173_s5 = sld [smem:[#allocation7 + $0x1b]] }
  0x5f   : > { %v766_v6 = vrot.slane %v752_v2, 1  ;;  %v767_v7 = vrot.slane %v754_v3, 1  ;;  %v771_v12 = vrot.slane %v756_v8, 1  ;;  %3230 = vst [vmem:[#allocation10_spill] sm:$0xff] %v2146_v28  ;;  %s1686_s6 = sld [smem:[#allocation7 + $0x1f]] }
  0x60   : > { %269 = vrot.lane.b32.xlu1 %v245_v19, %s1861_s22  ;;  %267 = vrot.lane.b32.xlu0 %v246_v20, %s1861_s22  ;;  %v799_v19 = vmul.f32 %v2124_v16, %v2036_v31  ;;  %v811_v33 = vrot.slane %v797_v18, 1  ;;  %s1689_s7 = sld [smem:[#allocation7 + $0x17]] }
  0x61   : > { %v768_v11 = vsel %vm664_vm4, %v766_v6, %v767_v7  ;;  %v772_v17 = vsel %vm664_vm4, %v767_v7, %v771_v12  ;;  %v2203_v3 = vstv %s2131_s28  ;;  %s2280_s8 = sld [smem:[#allocation7 + $0x20]] }
  0x62   : > { %v2199_v2 = vstv %s2143_s30  ;;  %3233 = vst [vmem:[#allocation13_spill] sm:$0xff] %v2203_v3  ;;  %s2303_s22 = sld [smem:[#allocation7 + $0x10]]  ;;  %s1706_s30 = smul.u32 24, %s3337_s2 }
  0x63   : > { %s2382_s23 = sld [smem:[#allocation7 + $0x19]] }
  0x64   : > { %382 = vrot.lane.b32.xlu1 %v369_v23, %s1863_s9  ;;  %s2392_s29 = sld [smem:[#allocation7 + $0x22]]  ;;  %s205_s2 = scalar_lea.vmem %s3183_s3, %s1706_s30 }
  0x65   : > { %s1695_s10 = sld [smem:[#allocation7 + $0x7]] }
  0x66   : > { %s1699_s11 = sld [smem:[#allocation7 + $0x8]] }
  0x67   : > { %s1700_s12 = sld [smem:[#allocation7 + $0x11]] }
  0x68   : > { %386 = vrot.lane.b32.xlu1 %v371_v25, %s1863_s9  ;;  %s1701_s13 = sld [smem:[#allocation7 + $0x1a]] }
  0x69   : > { %s1679_s17 = sld [smem:[#allocation7 + $0x3]] }
  0x6a   : > { %s1680_s19 = sld [smem:[#allocation7 + $0xc]] }
  0x6b   : > { %s1702_s20 = sld [smem:[#allocation7 + $0x23]] }
  0x6c   : > { %390 = vrot.lane.b32.xlu1 %v373_v27, %s1863_s9  ;;  %s2768_s24 = sld [smem:[#allocation7 + $0x15]] }
  0x6d   : > { %s2773_s25 = sld [smem:[#allocation7 + $0x1e]] }
  0x6e   : > { %s1694_s28 = sld [smem:[#allocation7 + $0x21]] }
  0x70   : > { %418 = vrot.lane.b32.xlu1 %v405_v30, %s1863_s9  ;;  %v2148_v30 = vstv %s1668_s26  ;;  %s1692_s26 = sld [smem:[#allocation7 + $0xf]] }
  0x71   : > { %3231 = vst [vmem:[#allocation11_spill] sm:$0xff] %v2148_v30 }
  0x74   : > { %422 = vrot.lane.b32.xlu1 %v407_v32, %s1863_s9 }
  0x78   : > { %426 = vrot.lane.b32.xlu1 %v409_v34, %s1863_s9  ;;  %v812_v34 = vrot.slane %v799_v19, 1 }
  0x7c   : > { %453 = vrot.lane.b32.xlu1 %v440_v37, %s1863_s9 }
  0x80   : > { %457 = vrot.lane.b32.xlu1 %v442_v39, %s1863_s9 }
  0x84   : > { %461 = vrot.lane.b32.xlu1 %v444_v41, %s1863_s9 }
  0x88   : > { %488 = vrot.lane.b32.xlu1 %v475_v44, %s1863_s9  ;;  %v2169_v44 = vstv %s2122_s27  ;;  %s1693_s27 = sld [smem:[#allocation7 + $0x18]] }
  0x8c   : > { %492 = vrot.lane.b32.xlu1 %v477_v46, %s1863_s9 }
  0x90   : > { %496 = vrot.lane.b32.xlu1 %v479_v48, %s1863_s9 }
  0x94   : > { %523 = vrot.lane.b32.xlu1 %v510_v50, %s1864_s14 }
  0x98   : > { %527 = vrot.lane.b32.xlu1 %v512_v51, %s1864_s14  ;;  %v813_v51 = vsel %vm664_vm4, %v811_v33, %v812_v34 }
  0x9c   : > { %531 = vrot.lane.b32.xlu1 %v514_v52, %s1864_s14  ;;  %v816_v52 = vrot.slane %v2157_v35, 1 }
  0x9e   : > { %v817_v8 = vsel %vm664_vm4, %v812_v34, %v816_v52 }
  0xa0   : > { %559 = vrot.lane.b32.xlu1 %v546_v54, %s1864_s14 }
  0xa4   : > { %563 = vrot.lane.b32.xlu1 %v548_v55, %s1864_s14 }
  0xa8   : > { %567 = vrot.lane.b32.xlu1 %v550_v56, %s1864_s14 }
  0xac   : > { %594 = vrot.lane.b32.xlu1 %v581_v58, %s1864_s14 }
  0xb0   : > { %598 = vrot.lane.b32.xlu1 %v583_v59, %s1864_s14 }
  0xb4   : > { %602 = vrot.lane.b32.xlu1 %v585_v60, %s1864_s14 }
  0xb8   : > { %629 = vrot.lane.b32.xlu1 %v616_v62, %s1864_s14  ;;  %v2192_v62 = vld [vmem:[#allocation2 + $0x68] sm:$0xfe] }
  0xbc   : > { %633 = vrot.lane.b32.xlu1 %v618_v0, %s1864_s14 }
  0xbe   : > { %v252_v9 = vpop.permute.xlu1 %251  ;;  %v248_v10 = vpop.permute.xlu0 %247 }
  0xbf   : > { %288 = vst.msk [vmem:[#allocation2 + $0x20] sm:$0x3] %vm287_vm1, %v252_v9 }
  0xc0   : > { %284 = vst.msk [vmem:[#allocation2] sm:$0xfc] %vm283_vm2, %v248_v10  ;;  %637 = vrot.lane.b32.xlu1 %v620_v5, %s1864_s14  ;;  %v2206_v5 = vstv %s2150_s4 }
  0xc1   : > { %3234 = vst [vmem:[#allocation14_spill] sm:$0xff] %v2206_v5  ;;  %v842_v9 = vmul.f32 %v2206_v5, %v2192_v62  ;;  %v844_v10 = vmul.f32 %v2206_v5, %v2047_v38 }
  0xc2   : > { %v254_v13 = vpop.permute.xlu1 %253  ;;  %v250_v14 = vpop.permute.xlu0 %249 }
  0xc3   : > { %289 = vst.msk [vmem:[#allocation2 + $0x30] sm:$0xfc] %vm283_vm2, %v254_v13  ;;  %v856_v33 = vrot.slane %v842_v9, 1  ;;  %v857_v34 = vrot.slane %v844_v10, 1 }
  0xc4   : > { %286 = vst.msk [vmem:[#allocation2 + $0x10] sm:$0xff] %vm285_vm3, %v250_v14  ;;  %775 = vrot.lane.b32.xlu1 %v768_v11, %s1863_s9  ;;  %v2220_v14 = vld [vmem:[#allocation2 + $0x88] sm:$0x7] }
  0xc5   : > { %v846_v35 = vmul.f32 %v2206_v5, %v2220_v14 }
  0xc6   : > { %v258_v20 = vpop.permute.xlu1 %257  ;;  %v256_v21 = vpop.permute.xlu0 %255  ;;  %v2135_v25 = vld [vmem:[#allocation2 + $0x20] sm:$0x3] }
  0xc7   : > { %v2133_v23 = vld [vmem:[#allocation2] sm:$0xff]  ;;  %291 = vst.msk [vmem:[#allocation2 + $0x50] sm:$0x3] %vm287_vm1, %v258_v20  ;;  %v372_v32 = vmul.f32 %v2020_v22, %v2135_v25 }
  0xc8   : > { %290 = vst.msk [vmem:[#allocation2 + $0x40] sm:$0xff] %vm285_vm3, %v256_v21  ;;  %v368_v27 = vmul.f32 %v2020_v22, %v2133_v23  ;;  %779 = vrot.lane.b32.xlu1 %v772_v17, %s1863_s9  ;;  %v2165_v42 = vld [vmem:[#allocation2 + $0x20] sm:$0x7]  ;;  %v312_v47 = vmul.f32 %v2133_v23, %v2146_v28  ;;  %v2233_v21 = vstv %s2173_s5 }
  0xc9   : > { %v2180_v50 = vld [vmem:[#allocation2] sm:$0xfe]  ;;  %v2190_v59 = vmul.f32 %v2169_v44, %v2165_v42  ;;  %3235 = vst [vmem:[#allocation15_spill] sm:$0xff] %v2233_v21 }
  0xca   : > { %380 = vrot.lane.b32.xlu0 %v368_v27, %s1863_s9  ;;  %v262_v37 = vpop.permute.xlu1 %261  ;;  %v260_v39 = vpop.permute.xlu0 %259  ;;  %v2159_v40 = vld [vmem:[#allocation2 + $0x30] sm:$0xff]  ;;  %v931_v6 = vmul.f32 %v2169_v44, %v2180_v50 }
  0xcb   : > { %v2161_v41 = vld [vmem:[#allocation2 + $0x10] sm:$0xff]  ;;  %293 = vst.msk [vmem:[#allocation2 + $0x70] sm:$0xff] %vm285_vm3, %v262_v37  ;;  %v320_v46 = vmul.f32 %v2159_v40, %v2148_v30  ;;  %v404_v48 = vmul.f32 %v2032_v29, %v2159_v40  ;;  %3232 = vst [vmem:[#allocation12_spill] sm:$0xff] %v2190_v59  ;;  %v3187_v18 = vrot.slane %v2190_v59, 1 }
  0xcc   : > { %292 = vst.msk [vmem:[#allocation2 + $0x60] sm:$0xfc] %vm283_vm2, %v260_v39  ;;  %783 = vrot.lane.b32.xlu1 %v771_v12, %s1863_s9  ;;  %v933_v54 = vmul.f32 %v2169_v44, %v2161_v41  ;;  %v943_v27 = vrot.slane %v931_v6, 1  ;;  %v861_v6 = vrot.slane %v846_v35, 1  ;;  %v2290_v35 = vld [vmem:[#allocation2 + $0xb8] sm:$0x7] }
  0xcd   : > { %v323_v60 = vadd.f32 %v320_v46, %v312_v47  ;;  %v2246_v47 = vld [vmem:[#allocation2 + $0x30] sm:$0xfe] }
  0xce   : > { %388 = vrot.lane.b32.xlu0 %v372_v32, %s1863_s9  ;;  %v266_v55 = vpop.permute.xlu1 %265  ;;  %v264_v56 = vpop.permute.xlu0 %263  ;;  %v2186_v58 = vld [vmem:[#allocation2 + $0x50] sm:$0x3]  ;;  %v944_v17 = vrot.slane %v933_v54, 1 }
  0xcf   : > { %295 = vst.msk [vmem:[#allocation2 + $0x90] sm:$0xfc] %vm283_vm2, %v266_v55  ;;  %v2196_v0 = vld [vmem:[#allocation2 + $0x40] sm:$0xff]  ;;  %v408_v7 = vmul.f32 %v2032_v29, %v2186_v58 }
  0xd0   : > { %294 = vst.msk [vmem:[#allocation2 + $0x80] sm:$0x3] %vm287_vm1, %v264_v56  ;;  %820 = vrot.lane.b32.xlu1 %v813_v51, %s1863_s9  ;;  %v2225_v19 = vmul.f32 %v2199_v2, %v2196_v0  ;;  %v2249_v51 = vsel %vm664_vm4, %v943_v27, %v944_v17  ;;  %v2254_v54 = vsel %vm664_vm4, %v944_v17, %v3187_v18  ;;  %v2278_v17 = vstv %s1689_s7 }
  0xd1   : > { %3237 = vst [vmem:[#allocation17_spill] sm:$0xff] %v2249_v51  ;;  %3238 = vst [vmem:[#allocation18_spill] sm:$0xff] %v2254_v54 }
  0xd2   : > { %416 = vrot.lane.b32.xlu0 %v404_v48, %s1863_s9  ;;  %v270_v11 = vpop.permute.xlu1 %269  ;;  %v268_v12 = vpop.permute.xlu0 %267  ;;  %v2296_v18 = vld [vmem:[#allocation2 + $0x70] sm:$0xff] }
  0xd3   : > { %v2218_v13 = vld [vmem:[#allocation2 + $0x60] sm:$0xff]  ;;  %297 = vst.msk [vmem:[#allocation2 + $0xb0] sm:$0x3] %vm287_vm1, %v270_v11  ;;  %v2271_v11 = vstv %s1686_s6 }
  0xd4   : > { %296 = vst.msk [vmem:[#allocation2 + $0xa0] sm:$0xff] %vm285_vm3, %v268_v12  ;;  %824 = vrot.lane.b32.xlu1 %v817_v8, %s1863_s9  ;;  %v328_v20 = vmul.f32 %v2218_v13, %v2203_v3  ;;  %v439_v32 = vmul.f32 %v2043_v36, %v2218_v13  ;;  %v976_v8 = vmul.f32 %v2199_v2, %v2246_v47  ;;  %3241 = vst [vmem:[#allocation21_spill] sm:$0xff] %v2271_v11  ;;  %v2285_v27 = vld [vmem:[#allocation2 + $0x60] sm:$0xfe] }
  0xd6   : > { %424 = vrot.lane.b32.xlu0 %v408_v7, %s1863_s9  ;;  %v2242_v39 = vld [vmem:[#allocation2 + $0x90] sm:$0xff]  ;;  %v2244_v46 = vpop.permute.xlu1 %382  ;;  %v331_v48 = vadd.f32 %v328_v20, %v323_v60  ;;  %v858_v60 = vsel %vm664_vm4, %v856_v33, %v857_v34  ;;  %v2263_v7 = vld [vmem:[#allocation2 + $0x98] sm:$0xfe]  ;;  %v889_v33 = vmul.f32 %v2271_v11, %v2058_v45 }
  0xd7   : > { %v2240_v37 = vld [vmem:[#allocation2 + $0x80] sm:$0x3]  ;;  %3236 = vst [vmem:[#allocation16_spill] sm:$0xff] %v2244_v46  ;;  %v336_v55 = vmul.f32 %v2242_v39, %v2233_v21  ;;  %v887_v12 = vmul.f32 %v2271_v11, %v2263_v7  ;;  %v474_v20 = vmul.f32 %v2054_v43, %v2242_v39 }
  0xd8   : > { %828 = vrot.lane.b32.xlu1 %v816_v52, %s1863_s9  ;;  %v443_v56 = vmul.f32 %v2043_v36, %v2240_v37  ;;  %v2273_v52 = vld [vmem:[#allocation2 + $0x50] sm:$0x7]  ;;  %v2317_v46 = vld [vmem:[#allocation2 + $0x80] sm:$0x7] }
  0xd9   : > { %v2269_v10 = vadd.f32 %v336_v55, %v331_v48  ;;  %v988_v48 = vrot.slane %v976_v8, 1  ;;  %v2308_v8 = vmul.f32 %v2271_v11, %v2290_v35 }
  0xda   : > { %451 = vrot.lane.b32.xlu0 %v439_v32, %s1863_s9  ;;  %v2267_v9 = vpop.permute.xlu1 %386  ;;  %v862_v32 = vsel %vm664_vm4, %v857_v34, %v861_v6  ;;  %v2292_v55 = vld [vmem:[#allocation2 + $0xb0] sm:$0x3]  ;;  %v901_v34 = vrot.slane %v887_v12, 1 }
  0xdb   : > { %3239 = vst [vmem:[#allocation19_spill] sm:$0xff] %v2267_v9  ;;  %3240 = vst [vmem:[#allocation20_spill] sm:$0xff] %v2269_v10  ;;  %v2301_v9 = vmul.f32 %v2199_v2, %v2273_v52  ;;  %v1023_v10 = vmul.f32 %v2278_v17, %v2296_v18  ;;  %v906_v5 = vrot.slane %v2308_v8, 1 }
  0xdc   : > { %865 = vrot.lane.b32.xlu1 %v858_v60, %s1863_s9 }
  0xdd   : > { %3243 = vst [vmem:[#allocation23_spill] sm:$0xff] %v2301_v9  ;;  %v3193_v59 = vrot.slane %v2301_v9, 1  ;;  %v1034_v11 = vrot.slane %v1023_v10, 1  ;;  %v2355_v9 = vld [vmem:[#allocation2 + $0xb0] sm:$0x7] }
  0xde   : > { %459 = vrot.lane.b32.xlu0 %v443_v56, %s1863_s9  ;;  %v2294_v60 = vpop.permute.xlu1 %390  ;;  %v989_v56 = vrot.slane %v2225_v19, 1  ;;  %v478_v19 = vmul.f32 %v2054_v43, %v2292_v55  ;;  %3250 = vst [vmem:[#allocation30_spill] sm:$0xff] %v2355_v9 }
  0xdf   : > { %3242 = vst [vmem:[#allocation22_spill] sm:$0xff] %v2294_v60  ;;  %v1021_v60 = vmul.f32 %v2278_v17, %v2285_v27 }
  0xe0   : > { %869 = vrot.lane.b32.xlu1 %v862_v32, %s1863_s9  ;;  %v902_v32 = vrot.slane %v889_v33, 1  ;;  %v2320_v12 = vsel %vm664_vm4, %v988_v48, %v989_v56  ;;  %v2337_v48 = vmul.f32 %v2278_v17, %v2317_v46 }
  0xe1   : > { %3244 = vst [vmem:[#allocation24_spill] sm:$0xff] %v2320_v12  ;;  %v1033_v51 = vrot.slane %v1021_v60, 1  ;;  %v2341_v60 = vld [vmem:[#allocation2 + $0x90] sm:$0xfe] }
  0xe2   : > { %486 = vrot.lane.b32.xlu0 %v474_v20, %s1863_s9  ;;  %v2323_v54 = vpop.permute.xlu1 %418  ;;  %v2328_v20 = vsel %vm664_vm4, %v989_v56, %v3193_v59  ;;  %3248 = vst [vmem:[#allocation28_spill] sm:$0xff] %v2337_v48  ;;  %v903_v10 = vsel %vm664_vm4, %v901_v34, %v902_v32  ;;  %v2344_v56 = vstv %s2280_s8  ;;  %v2346_v59 = vld [vmem:[#allocation2 + $0xa0] sm:$0xff]  ;;  %v321_v34 = vmul.f32 %v2196_v0, %v2148_v30 }
  0xe3   : > { %3245 = vst [vmem:[#allocation25_spill] sm:$0xff] %v2323_v54  ;;  %3246 = vst [vmem:[#allocation26_spill] sm:$0xff] %v2328_v20  ;;  %v2333_v33 = vsel %vm664_vm4, %v1033_v51, %v1034_v11  ;;  %v313_v51 = vmul.f32 %v2161_v41, %v2146_v28  ;;  %v2362_v20 = vstv %s2303_s22  ;;  %v907_v8 = vsel %vm664_vm4, %v902_v32, %v906_v5 }
  0xe4   : > { %873 = vrot.lane.b32.xlu1 %v861_v6, %s1863_s9  ;;  %3247 = vst [vmem:[#allocation27_spill] sm:$0xff] %v2333_v33  ;;  %v509_v33 = vmul.f32 %v2065_v49, %v2133_v23  ;;  %v3251_v28 = vrot.slane %v2337_v48, 1  ;;  %v1066_v30 = vmul.f32 %v2344_v56, %v2341_v60  ;;  %v337_v32 = vmul.f32 %v2346_v59, %v2233_v21 }
  0xe5   : > { %v324_v54 = vadd.f32 %v321_v34, %v313_v51  ;;  %v2388_v48 = vmul.f32 %v2344_v56, %v2355_v9 }
  0xe6   : > { %494 = vrot.lane.b32.xlu0 %v478_v19, %s1863_s9  ;;  %v2348_v6 = vpop.permute.xlu1 %422  ;;  %v329_v19 = vmul.f32 %v2296_v18, %v2203_v3  ;;  %v2371_v23 = vsel %vm664_vm4, %v1034_v11, %v3251_v28  ;;  %v934_v3 = vmul.f32 %v2169_v44, %v2025_v24  ;;  %v1078_v11 = vrot.slane %v1066_v30, 1 }
  0xe7   : > { %3249 = vst [vmem:[#allocation29_spill] sm:$0xff] %v2348_v6  ;;  %v932_v6 = vmul.f32 %v2169_v44, %v2096_v63  ;;  %3252 = vst [vmem:[#allocation31_spill] sm:$0xff] %v2371_v23  ;;  %v1068_v63 = vmul.f32 %v2344_v56, %v2346_v59  ;;  %v3201_v23 = vrot.slane %v2388_v48, 1  ;;  %v1259_v30 = vmul.f32 %v2362_v20, %v2196_v0 }
  0xe8   : > { %910 = vrot.lane.b32.xlu1 %v903_v10, %s1863_s9  ;;  %v1198_v10 = vld [vmem:[#allocation2 + $0x30] sm:$0xfc]  ;;  %v332_v51 = vadd.f32 %v329_v19, %v324_v54  ;;  %v947_v9 = vrot.slane %v934_v3, 1  ;;  %v545_v3 = vmul.f32 %v2074_v53, %v2159_v40 }
  0xe9   : > { %v1079_v34 = vrot.slane %v1068_v63, 1  ;;  %v946_v21 = vrot.slane %v932_v6, 1  ;;  %v1257_v12 = vmul.f32 %v2362_v20, %v1198_v10  ;;  %v1270_v10 = vrot.slane %v1259_v30, 2 }
  0xea   : > { %521 = vrot.lane.b32.xlu0 %v509_v33, %s1864_s14  ;;  %v2384_v28 = vpop.permute.xlu1 %426  ;;  %v513_v33 = vmul.f32 %v2065_v49, %v2135_v25  ;;  %v936_v25 = vmul.f32 %v2169_v44, %v2107_v4  ;;  %v2402_v54 = vadd.f32 %v337_v32, %v332_v51  ;;  %v2429_v51 = vld [vmem:[#allocation2 + $0x60] sm:$0xfc]  ;;  %v2441_v30 = vstv %s2392_s29 }
  0xeb   : > { %3253 = vst [vmem:[#allocation32_spill] sm:$0xff] %v2384_v28  ;;  %v1200_v28 = vld [vmem:[#allocation2 + $0x50] sm:$0xf]  ;;  %v2412_v19 = vsel %vm664_vm4, %v1079_v34, %v3201_v23  ;;  %v1269_v63 = vrot.slane %v1257_v12, 2  ;;  %v948_v32 = vsel %vm664_vm4, %v946_v21, %v947_v9  ;;  %3256 = vst [vmem:[#allocation35_spill] sm:$0xff] %v2429_v51 }
  0xec   : > { %914 = vrot.lane.b32.xlu1 %v907_v8, %s1863_s9  ;;  %v2405_v8 = vsel %vm664_vm4, %v1078_v11, %v1079_v34  ;;  %v2417_v4 = vmul.f32 %v2362_v20, %v1200_v28  ;;  %v951_v11 = vrot.slane %v936_v25, 1  ;;  %v1204_v28 = vld [vmem:[#allocation2 + $0x80] sm:$0xf]  ;;  %v1206_v21 = vld [vmem:[#allocation2 + $0x90] sm:$0xfc]  ;;  %v977_v25 = vmul.f32 %v2199_v2, %v2117_v15 }
  0xed   : > { %v2421_v44 = vsel %vm1125_vm5, %v1269_v63, %v1270_v10  ;;  %v979_v63 = vmul.f32 %v2199_v2, %v2036_v31  ;;  %v1208_v23 = vld [vmem:[#allocation2 + $0xb0] sm:$0xf] }
  0xee   : > { %529 = vrot.lane.b32.xlu0 %v513_v33, %s1864_s14  ;;  %v2407_v6 = vpop.permute.xlu1 %453  ;;  %3254 = vst [vmem:[#allocation33_spill] sm:$0xff] %v2417_v4  ;;  %3255 = vst [vmem:[#allocation34_spill] sm:$0xff] %v2421_v44  ;;  %v3202_v12 = vrot.slane %v2417_v4, 2  ;;  %v2427_v33 = vstv %s2382_s23 }
  0xf0   : > { %918 = vrot.lane.b32.xlu1 %v906_v5, %s1863_s9  ;;  %v549_v5 = vmul.f32 %v2074_v53, %v2186_v58  ;;  %v2438_v34 = vsel %vm1125_vm5, %v1270_v10, %v3202_v12  ;;  %v1304_v58 = vmul.f32 %v2427_v33, %v2296_v18  ;;  %v952_v10 = vsel %vm664_vm4, %v947_v9, %v951_v11 }
  0xf1   : > { %3258 = vst [vmem:[#allocation37_spill] sm:$0xff] %v2438_v34  ;;  %v2455_v12 = vmul.f32 %v2427_v33, %v1204_v28  ;;  %v1347_v34 = vmul.f32 %v2441_v30, %v1206_v21  ;;  %v991_v9 = vrot.slane %v977_v25, 1  ;;  %v992_v28 = vrot.slane %v979_v63, 1 }
  0xf2   : > { %557 = vrot.lane.b32.xlu0 %v545_v3, %s1864_s14  ;;  %v2431_v40 = vpop.permute.xlu1 %457  ;;  %v1302_v3 = vmul.f32 %v2427_v33, %v2429_v51  ;;  %v1315_v4 = vrot.slane %v1304_v58, 2  ;;  %v580_v51 = vmul.f32 %v2083_v57, %v2218_v13  ;;  %v981_v13 = vmul.f32 %v2199_v2, %v2137_v26 }
  0xf3   : > { %3257 = vst [vmem:[#allocation36_spill] sm:$0xff] %v2431_v40  ;;  %v3206_v44 = vrot.slane %v2455_v12, 2  ;;  %v1349_v40 = vmul.f32 %v2441_v30, %v2346_v59  ;;  %v1359_v58 = vrot.slane %v1347_v34, 2  ;;  %v584_v25 = vmul.f32 %v2083_v57, %v2240_v37 }
  0xf4   : > { %955 = vrot.lane.b32.xlu1 %v948_v32, %s1864_s14  ;;  %v1314_v15 = vrot.slane %v1302_v3, 2  ;;  %v993_v2 = vsel %vm664_vm4, %v991_v9, %v992_v28  ;;  %v615_v37 = vmul.f32 %v2092_v61, %v2242_v39  ;;  %v1022_v63 = vmul.f32 %v2278_v17, %v2192_v62 }
  0xf5   : > { %v2478_v21 = vsel %vm1125_vm5, %v1315_v4, %v3206_v44  ;;  %v619_v9 = vmul.f32 %v2092_v61, %v2292_v55  ;;  %v370_v62 = vmul.f32 %v2020_v22, %v2161_v41  ;;  %v1067_v22 = vmul.f32 %v2344_v56, %v2263_v7 }
  0xf6   : > { %565 = vrot.lane.b32.xlu0 %v549_v5, %s1864_s14  ;;  %v2457_v32 = vpop.permute.xlu1 %461  ;;  %v2466_v5 = vmul.f32 %v2441_v30, %v1208_v23  ;;  %v2470_v3 = vsel %vm1125_vm5, %v1314_v15, %v1315_v4  ;;  %v1360_v23 = vrot.slane %v1349_v40, 2  ;;  %v996_v4 = vrot.slane %v981_v13, 1 }
  0xf7   : > { %3259 = vst [vmem:[#allocation38_spill] sm:$0xff] %v2457_v32  ;;  %v1036_v39 = vrot.slane %v1022_v63, 1  ;;  %v1071_v7 = vmul.f32 %v2344_v56, %v2290_v35 }
  0xf8   : > { %3260 = vst [vmem:[#allocation39_spill] sm:$0xff] %v2466_v5  ;;  %959 = vrot.lane.b32.xlu1 %v952_v10, %s1864_s14  ;;  %v3205_v32 = vrot.slane %v2466_v5, 2  ;;  %v2486_v34 = vsel %vm1125_vm5, %v1359_v58, %v1360_v23  ;;  %v997_v40 = vsel %vm664_vm4, %v992_v28, %v996_v4  ;;  %v1026_v28 = vmul.f32 %v2278_v17, %v2220_v14 }
  0xfa   : > { %592 = vrot.lane.b32.xlu0 %v580_v51, %s1864_s14  ;;  %v2481_v10 = vpop.permute.xlu1 %488  ;;  %v2491_v26 = vsel %vm1125_vm5, %v1360_v23, %v3205_v32  ;;  %v1041_v23 = vrot.slane %v1026_v28, 1  ;;  %v2555_v28 = vstv %s1695_s10  ;;  %v3264_v32 = vld [vmem:[#allocation30_spill] sm:$0xff] }
  0xfb   : > { %3261 = vst [vmem:[#allocation40_spill] sm:$0xff] %v2491_v26 }
  0xfc   : > { %963 = vrot.lane.b32.xlu1 %v951_v11, %s1864_s14  ;;  %v1024_v11 = vmul.f32 %v2278_v17, %v2047_v38  ;;  %v1069_v17 = vmul.f32 %v2344_v56, %v2058_v45 }
  0xfe   : > { %600 = vrot.lane.b32.xlu0 %v584_v25, %s1864_s14  ;;  %v2496_v51 = vpop.permute.xlu1 %492  ;;  %v1037_v58 = vrot.slane %v1024_v11, 1  ;;  %v1082_v63 = vrot.slane %v1069_v17, 1 }
 0x100   : > { %1000 = vrot.lane.b32.xlu1 %v993_v2, %s1864_s14  ;;  %v1038_v55 = vsel %vm664_vm4, %v1036_v39, %v1037_v58  ;;  %v406_v2 = vmul.f32 %v2032_v29, %v2196_v0  ;;  %v1042_v14 = vsel %vm664_vm4, %v1037_v58, %v1041_v23  ;;  %v476_v29 = vmul.f32 %v2054_v43, %v2346_v59  ;;  %v2550_v58 = vld [vmem:[#allocation2 + $0x8] sm:$0xfc] }
 0x101   : > { %v511_v43 = vmul.f32 %v2065_v49, %v2161_v41  ;;  %v1213_v56 = vmul.f32 %v2555_v28, %v2550_v58  ;;  %v547_v49 = vmul.f32 %v2074_v53, %v2196_v0 }
 0x102   : > { %627 = vrot.lane.b32.xlu0 %v615_v37, %s1864_s14  ;;  %v2507_v15 = vpop.permute.xlu1 %496  ;;  %v441_v37 = vmul.f32 %v2043_v36, %v2296_v18 }
 0x104   : > { %1004 = vrot.lane.b32.xlu1 %v997_v40, %s1864_s14  ;;  %v1081_v40 = vrot.slane %v1067_v22, 1 }
 0x106   : > { %635 = vrot.lane.b32.xlu0 %v619_v9, %s1864_s14  ;;  %v2515_v13 = vpop.permute.xlu1 %523  ;;  %v1083_v36 = vsel %vm664_vm4, %v1081_v40, %v1082_v63  ;;  %v1086_v9 = vrot.slane %v1071_v7, 1  ;;  %v617_v7 = vmul.f32 %v2092_v61, %v2346_v59  ;;  %v751_v61 = vmul.f32 %v2101_v1, %v2180_v50 }
 0x107   : > { %v798_v50 = vmul.f32 %v2124_v16, %v2196_v0 }
 0x108   : > { %1008 = vrot.lane.b32.xlu1 %v996_v4, %s1864_s14  ;;  %v1087_v35 = vsel %vm664_vm4, %v1082_v63, %v1086_v9  ;;  %v2582_v63 = vld [vmem:[#allocation2 + $0x38] sm:$0xfc] }
 0x10a   : > { %384 = vrot.lane.b32.xlu0 %v370_v62, %s1863_s9  ;;  %v2522_v25 = vpop.permute.xlu1 %527  ;;  %v1215_v62 = vmul.f32 %v2555_v28, %v2025_v24 }
 0x10c   : > { %1045 = vrot.lane.b32.xlu1 %v1038_v55, %s1864_s14 }
 0x10e   : > { %420 = vrot.lane.b32.xlu0 %v406_v2, %s1863_s9  ;;  %v2533_v4 = vpop.permute.xlu1 %531  ;;  %v1227_v2 = vrot.slane %v1213_v56, 2  ;;  %v2599_v56 = vld [vmem:[#allocation2 + $0x58] sm:$0xf] }
 0x110   : > { %1049 = vrot.lane.b32.xlu1 %v1042_v14, %s1864_s14  ;;  %v1228_v14 = vrot.slane %v1215_v62, 2 }
 0x112   : > { %455 = vrot.lane.b32.xlu0 %v441_v37, %s1863_s9  ;;  %v2543_v11 = vpop.permute.xlu1 %559  ;;  %v582_v37 = vmul.f32 %v2083_v57, %v2296_v18  ;;  %v1229_v53 = vsel %vm1125_vm5, %v1227_v2, %v1228_v14  ;;  %v753_v57 = vmul.f32 %v2101_v1, %v2161_v41 }
 0x114   : > { %1053 = vrot.lane.b32.xlu1 %v1041_v23, %s1864_s14  ;;  %v2565_v23 = vld [vmem:[#allocation2 + $0x28] sm:$0xf] }
 0x115   : > { %v1217_v22 = vmul.f32 %v2555_v28, %v2565_v23 }
 0x116   : > { %490 = vrot.lane.b32.xlu0 %v476_v29, %s1863_s9  ;;  %v2548_v39 = vpop.permute.xlu1 %563 }
 0x117   : > { %v1232_v29 = vrot.slane %v1217_v22, 2  ;;  %v1262_v22 = vmul.f32 %v2362_v20, %v2599_v56 }
 0x118   : > { %1090 = vrot.lane.b32.xlu1 %v1083_v36, %s1864_s14  ;;  %v755_v36 = vmul.f32 %v2101_v1, %v2165_v42  ;;  %v796_v1 = vmul.f32 %v2124_v16, %v2246_v47  ;;  %v800_v47 = vmul.f32 %v2124_v16, %v2273_v52 }
 0x11a   : > { %525 = vrot.lane.b32.xlu0 %v511_v43, %s1864_s14  ;;  %v2563_v55 = vpop.permute.xlu1 %567  ;;  %v1258_v43 = vmul.f32 %v2362_v20, %v2582_v63  ;;  %v769_v42 = vrot.slane %v755_v36, 1 }
 0x11c   : > { %1094 = vrot.lane.b32.xlu1 %v1087_v35, %s1864_s14  ;;  %v1260_v35 = vmul.f32 %v2362_v20, %v2036_v31  ;;  %v1272_v2 = vrot.slane %v1258_v43, 2  ;;  %v808_v43 = vrot.slane %v796_v1, 1 }
 0x11e   : > { %561 = vrot.lane.b32.xlu0 %v547_v49, %s1864_s14  ;;  %v2573_v17 = vpop.permute.xlu1 %594  ;;  %v764_v49 = vrot.slane %v753_v57, 1  ;;  %v1277_v57 = vrot.slane %v1262_v22, 2  ;;  %v2629_v22 = vld [vmem:[#allocation2 + $0x88] sm:$0xf] }
 0x120   : > { %1098 = vrot.lane.b32.xlu1 %v1086_v9, %s1864_s14  ;;  %v1233_v9 = vsel %vm1125_vm5, %v1228_v14, %v1232_v29  ;;  %v1273_v14 = vrot.slane %v1260_v35, 2  ;;  %v770_v20 = vsel %vm664_vm4, %v764_v49, %v769_v42  ;;  %v809_v35 = vrot.slane %v798_v50, 1 }
 0x122   : > { %596 = vrot.lane.b32.xlu0 %v582_v37, %s1864_s14  ;;  %v2580_v40 = vpop.permute.xlu1 %598  ;;  %v763_v37 = vrot.slane %v751_v61, 1  ;;  %v1274_v36 = vsel %vm1125_vm5, %v1272_v2, %v1273_v14  ;;  %v1305_v2 = vmul.f32 %v2427_v33, %v2047_v38  ;;  %v3262_v38 = vld [vmem:[#allocation14_spill] sm:$0xff] }
 0x123   : > { %v841_v1 = vmul.f32 %v3262_v38, %v2285_v27  ;;  %v843_v50 = vmul.f32 %v3262_v38, %v2296_v18  ;;  %v845_v27 = vmul.f32 %v3262_v38, %v2317_v46 }
 0x124   : > { %1236 = vrot.lane.b32.xlu1 %v1229_v53, %s1863_s9  ;;  %v765_v53 = vsel %vm664_vm4, %v763_v37, %v764_v49  ;;  %v810_v49 = vsel %vm664_vm4, %v808_v43, %v809_v35  ;;  %v814_v37 = vrot.slane %v800_v47, 1  ;;  %v1318_v52 = vrot.slane %v1305_v2, 2  ;;  %v2648_v47 = vld [vmem:[#allocation2 + $0x98] sm:$0xfc] }
 0x125   : > { %v1348_v2 = vmul.f32 %v2441_v30, %v2648_v47 }
 0x126   : > { %631 = vrot.lane.b32.xlu0 %v617_v7, %s1864_s14  ;;  %v2601_v62 = vpop.permute.xlu1 %602 }
 0x128   : > { %1240 = vrot.lane.b32.xlu1 %v1233_v9, %s1863_s9  ;;  %v2617_v9 = vld [vmem:[#allocation2 + $0x68] sm:$0xfc] }
 0x129   : > { %v1303_v61 = vmul.f32 %v2427_v33, %v2617_v9 }
 0x12a   : > { %781 = vrot.lane.b32.xlu0 %v769_v42, %s1863_s9  ;;  %v2614_v7 = vpop.permute.xlu1 %629 }
 0x12b   : > { %v1317_v16 = vrot.slane %v1303_v61, 2 }
 0x12c   : > { %1244 = vrot.lane.b32.xlu1 %v1232_v29, %s1863_s9  ;;  %v1278_v29 = vsel %vm1125_vm5, %v1273_v14, %v1277_v57  ;;  %v1307_v14 = vmul.f32 %v2427_v33, %v2629_v22 }
 0x12e   : > { %773 = vrot.lane.b32.xlu0 %v765_v53, %s1863_s9  ;;  %v2631_v42 = vpop.permute.xlu1 %633  ;;  %v815_v53 = vsel %vm664_vm4, %v809_v35, %v814_v37  ;;  %v1322_v43 = vrot.slane %v1307_v14, 2  ;;  %v853_v35 = vrot.slane %v841_v1, 1 }
 0x130   : > { %1281 = vrot.lane.b32.xlu1 %v1274_v36, %s1863_s9  ;;  %v1323_v61 = vsel %vm1125_vm5, %v1318_v52, %v1322_v43 }
 0x132   : > { %777 = vrot.lane.b32.xlu0 %v770_v20, %s1863_s9  ;;  %v2645_v36 = vpop.permute.xlu1 %637  ;;  %v1319_v20 = vsel %vm1125_vm5, %v1317_v16, %v1318_v52  ;;  %v2663_v16 = vld [vmem:[#allocation2 + $0xb8] sm:$0xf] }
 0x133   : > { %v1352_v38 = vmul.f32 %v2441_v30, %v2663_v16 }
 0x134   : > { %1285 = vrot.lane.b32.xlu1 %v1278_v29, %s1863_s9  ;;  %v854_v29 = vrot.slane %v843_v50, 1 }
 0x136   : > { %818 = vrot.lane.b32.xlu0 %v810_v49, %s1863_s9  ;;  %v1350_v49 = vmul.f32 %v2441_v30, %v2058_v45  ;;  %v855_v46 = vsel %vm664_vm4, %v853_v35, %v854_v29 }
 0x138   : > { %1289 = vrot.lane.b32.xlu1 %v1277_v57, %s1863_s9  ;;  %v2656_v57 = vpop.permute.xlu1 %775  ;;  %v1363_v52 = vrot.slane %v1350_v49, 2 }
 0x13a   : > { %822 = vrot.lane.b32.xlu0 %v815_v53, %s1863_s9  ;;  %v859_v53 = vrot.slane %v845_v27, 1 }
 0x13c   : > { %v2650_v33 = vpop.permute.xlu0 %380  ;;  %1326 = vrot.lane.b32.xlu1 %v1319_v20, %s1863_s9  ;;  %v2674_v45 = vpop.permute.xlu1 %779  ;;  %v860_v50 = vsel %vm664_vm4, %v854_v29, %v859_v53  ;;  %v3263_v20 = vld [vmem:[#allocation21_spill] sm:$0xff] }
 0x13d   : > { %v886_v35 = vmul.f32 %v3263_v20, %v2341_v60  ;;  %v888_v27 = vmul.f32 %v3263_v20, %v2346_v59  ;;  %v890_v29 = vmul.f32 %v3263_v20, %v3264_v32  ;;  %v2689_v60 = vstv %s1699_s11 }
 0x13e   : > { %826 = vrot.lane.b32.xlu0 %v814_v37, %s1863_s9  ;;  %v1362_v37 = vrot.slane %v1348_v2, 2  ;;  %v1367_v2 = vrot.slane %v1352_v38, 2  ;;  %3265 = vst [vmem:[#allocation14_spill] sm:$0xff] %v2689_v60  ;;  %v1395_v38 = vmul.f32 %v2689_v60, %v2025_v24 }
 0x13f   : > { %v898_v49 = vrot.slane %v886_v35, 1  ;;  %v904_v20 = vrot.slane %v890_v29, 1 }
 0x140   : > { %v2665_v14 = vpop.permute.xlu0 %388  ;;  %1330 = vrot.lane.b32.xlu1 %v1323_v61, %s1863_s9  ;;  %v1364_v61 = vsel %vm1125_vm5, %v1362_v37, %v1363_v52  ;;  %v2692_v44 = vpop.permute.xlu1 %783  ;;  %v1393_v37 = vmul.f32 %v2689_v60, %v2550_v58  ;;  %v1397_v58 = vmul.f32 %v2689_v60, %v2565_v23  ;;  %v3278_v60 = vld [vmem:[#allocation20_spill] sm:$0xff] }
 0x142   : > { %863 = vrot.lane.b32.xlu0 %v855_v46, %s1863_s9  ;;  %v899_v46 = vrot.slane %v888_v27, 1  ;;  %v1407_v35 = vrot.slane %v1393_v37, 2  ;;  %v2717_v37 = vstv %s1700_s12 }
 0x143   : > { %3266 = vst [vmem:[#allocation21_spill] sm:$0xff] %v2717_v37 }
 0x144   : > { %v2672_v1 = vpop.permute.xlu0 %416  ;;  %1334 = vrot.lane.b32.xlu1 %v1322_v43, %s1863_s9  ;;  %v1368_v43 = vsel %vm1125_vm5, %v1363_v52, %v1367_v2  ;;  %v900_v32 = vsel %vm664_vm4, %v898_v49, %v899_v46  ;;  %v1408_v52 = vrot.slane %v1395_v38, 2  ;;  %v905_v24 = vsel %vm664_vm4, %v899_v46, %v904_v20 }
 0x145   : > { %v1412_v49 = vrot.slane %v1397_v58, 2  ;;  %v1438_v46 = vmul.f32 %v2717_v37, %v2582_v63 }
 0x146   : > { %867 = vrot.lane.b32.xlu0 %v860_v50, %s1863_s9 }
 0x147   : > { %v1413_v23 = vsel %vm1125_vm5, %v1408_v52, %v1412_v49  ;;  %v1452_v58 = vrot.slane %v1438_v46, 2  ;;  %v2743_v46 = vstv %s1701_s13 }
 0x148   : > { %v2684_v30 = vpop.permute.xlu0 %424  ;;  %1371 = vrot.lane.b32.xlu1 %v1364_v61, %s1863_s9  ;;  %v1409_v61 = vsel %vm1125_vm5, %v1407_v35, %v1408_v52  ;;  %v1442_v52 = vmul.f32 %v2717_v37, %v2599_v56  ;;  %v3272_v56 = vld [vmem:[#allocation12_spill] sm:$0xff] }
 0x14a   : > { %871 = vrot.lane.b32.xlu0 %v859_v53, %s1863_s9  ;;  %v2704_v53 = vpop.permute.xlu1 %820 }
 0x14c   : > { %v2699_v50 = vpop.permute.xlu0 %451  ;;  %1375 = vrot.lane.b32.xlu1 %v1368_v43, %s1863_s9 }
 0x14e   : > { %908 = vrot.lane.b32.xlu0 %v900_v32, %s1863_s9  ;;  %v2714_v43 = vpop.permute.xlu1 %824  ;;  %v3267_v32 = vld [vmem:[#allocation17_spill] sm:$0xff] }
 0x150   : > { %v2708_v27 = vpop.permute.xlu0 %459  ;;  %1379 = vrot.lane.b32.xlu1 %v1367_v2, %s1863_s9  ;;  %v1440_v2 = vmul.f32 %v2717_v37, %v2036_v31  ;;  %v3269_v31 = vld [vmem:[#allocation18_spill] sm:$0xff]  ;;  %v3274_v37 = vld [vmem:[#allocation16_spill] sm:$0xff] }
 0x151   : > { %3271 = vst [vmem:[#allocation18_spill] sm:$0xff] %v2743_v46 }
 0x152   : > { %912 = vrot.lane.b32.xlu0 %v905_v24, %s1863_s9  ;;  %v2730_v35 = vpop.permute.xlu1 %828 }
 0x153   : > { %3268 = vst [vmem:[#allocation30_spill] sm:$0xff] %v2730_v35 }
 0x154   : > { %v487_v29 = vpop.permute.xlu0 %486  ;;  %1416 = vrot.lane.b32.xlu1 %v1409_v61, %s1864_s14  ;;  %v1457_v61 = vrot.slane %v1442_v52, 2 }
 0x156   : > { %916 = vrot.lane.b32.xlu0 %v904_v20, %s1863_s9  ;;  %v1453_v20 = vrot.slane %v1440_v2, 2  ;;  %v2740_v5 = vpop.permute.xlu1 %865  ;;  %v3273_v2 = vrot.slane %v3272_v56, 1  ;;  %v3275_v56 = vld [vmem:[#allocation24_spill] sm:$0xff] }
 0x157   : > { %3270 = vst [vmem:[#allocation17_spill] sm:$0xff] %v2740_v5  ;;  %v3277_v5 = vld [vmem:[#allocation25_spill] sm:$0xff] }
 0x158   : > { %v2725_v38 = vpop.permute.xlu0 %494  ;;  %1420 = vrot.lane.b32.xlu1 %v1413_v23, %s1864_s14  ;;  %v1454_v63 = vsel %vm1125_vm5, %v1452_v58, %v1453_v20  ;;  %v1763_v58 = vld [vmem:[#allocation2 + $0x78] sm:$0xff]  ;;  %v428_v26 = vsel %vm392_vm6, %v2672_v1, %v3277_v5 }
 0x159   : > { %v1485_v52 = vmul.f32 %v1763_v58, %v2743_v46  ;;  %v1487_v58 = vmul.f32 %v2743_v46, %v2629_v22  ;;  %v3279_v22 = vld [vmem:[#allocation26_spill] sm:$0xff] }
 0x15a   : > { %953 = vrot.lane.b32.xlu0 %v3267_v32, %s1864_s14  ;;  %v1483_v32 = vmul.f32 %v2743_v46, %v2617_v9 }
 0x15b   : > { %v1498_v9 = vrot.slane %v1485_v52, 2  ;;  %v1502_v1 = vrot.slane %v1487_v58, 2 }
 0x15c   : > { %v522_v24 = vpop.permute.xlu0 %521  ;;  %1424 = vrot.lane.b32.xlu1 %v1412_v49, %s1864_s14  ;;  %v1458_v49 = vsel %vm1125_vm5, %v1453_v20, %v1457_v61  ;;  %v2758_v20 = vpop.permute.xlu1 %869 }
 0x15d   : > { %3276 = vst [vmem:[#allocation12_spill] sm:$0xff] %v2758_v20  ;;  %v1503_v58 = vsel %vm1125_vm5, %v1498_v9, %v1502_v1 }
 0x15e   : > { %957 = vrot.lane.b32.xlu0 %v3269_v31, %s1864_s14 }
 0x160   : > { %v2738_v23 = vpop.permute.xlu0 %529  ;;  %1461 = vrot.lane.b32.xlu1 %v1454_v63, %s1864_s14  ;;  %v393_v63 = vsel %vm392_vm6, %v2650_v33, %v3274_v37  ;;  %v463_v37 = vsel %vm392_vm6, %v2699_v50, %v2407_v6  ;;  %v534_v6 = vsel %vm533_vm7, %v522_v24, %v2515_v13  ;;  %v648_v50 = vld [vmem:[#allocation2] sm:$0xfe]  ;;  %v1764_v24 = vld [vmem:[#allocation2 + $0xa8] sm:$0xff] }
 0x161   : > { %v399_v35 = vadd.f32 %v393_v63, %v3278_v60  ;;  %v498_v60 = vsel %vm392_vm6, %v487_v29, %v2481_v10  ;;  %v2781_v63 = vpop.permute.xlu1 %873  ;;  %v3282_v10 = vld [vmem:[#allocation23_spill] sm:$0xff] }
 0x162   : > { %961 = vrot.lane.b32.xlu0 %v3273_v2, %s1864_s14  ;;  %v1497_v2 = vrot.slane %v1483_v32, 2  ;;  %3280 = vst [vmem:[#allocation16_spill] sm:$0xff] %v2781_v63  ;;  %v3283_v29 = vrot.slane %v3282_v10, 1  ;;  %v2810_v10 = vstv %s2768_s24 }
 0x163   : > { %v2832_v46 = vmul.f32 %v2810_v10, %v2296_v18  ;;  %v3286_v18 = vld [vmem:[#allocation31_spill] sm:$0xff] }
 0x164   : > { %v558_v31 = vpop.permute.xlu0 %557  ;;  %1465 = vrot.lane.b32.xlu1 %v1458_v49, %s1864_s14  ;;  %v434_v49 = vadd.f32 %v428_v26, %v399_v35  ;;  %v1499_v5 = vsel %vm1125_vm5, %v1497_v2, %v1498_v9  ;;  %v2785_v26 = vstv %s1679_s17  ;;  %v2787_v35 = vstv %s1680_s19 }
 0x166   : > { %998 = vrot.lane.b32.xlu0 %v3275_v56, %s1864_s14  ;;  %v469_v32 = vadd.f32 %v463_v37, %v434_v49  ;;  %v2790_v56 = vstv %s1702_s20  ;;  %v569_v49 = vsel %vm533_vm7, %v558_v31, %v2543_v11  ;;  %v2816_v11 = vmul.f32 %v2787_v35, %v2196_v0 }
 0x167   : > { %3281 = vst [vmem:[#allocation24_spill] sm:$0xff] %v2790_v56  ;;  %v1528_v13 = vmul.f32 %v2790_v56, %v2648_v47  ;;  %v1530_v37 = vmul.f32 %v1764_v24, %v2790_v56  ;;  %v652_v47 = vld [vmem:[#allocation2 + $0x60] sm:$0xfe]  ;;  %v2819_v31 = vstv %s2773_s25 }
 0x168   : > { %v2766_v33 = vpop.permute.xlu0 %565  ;;  %1469 = vrot.lane.b32.xlu1 %v1457_v61, %s1864_s14  ;;  %v650_v61 = vld [vmem:[#allocation2 + $0x30] sm:$0xfe]  ;;  %v504_v2 = vadd.f32 %v498_v60, %v469_v32  ;;  %v658_v32 = vmul.f32 %v2785_v26, %v648_v50  ;;  %v697_v0 = vmul.f32 %v2810_v10, %v652_v47  ;;  %v3216_v63 = vrot.slane %v2816_v11, 1 }
 0x169   : > { %v678_v9 = vmul.f32 %v2787_v35, %v650_v61  ;;  %v654_v50 = vld [vmem:[#allocation2 + $0x90] sm:$0xfe]  ;;  %v2824_v61 = vpop.permute.xlu1 %910  ;;  %v1543_v24 = vrot.slane %v1530_v37, 2 }
 0x16a   : > { %1002 = vrot.lane.b32.xlu0 %v3279_v22, %s1864_s14  ;;  %v2803_v22 = vmul.f32 %v2785_v26, %v2161_v41  ;;  %3285 = vst [vmem:[#allocation25_spill] sm:$0xff] %v2824_v61  ;;  %v716_v37 = vmul.f32 %v2819_v31, %v654_v50 }
 0x16c   : > { %v593_v52 = vpop.permute.xlu0 %592  ;;  %1506 = vrot.lane.b32.xlu1 %v1499_v5, %s1864_s14  ;;  %v540_v5 = vadd.f32 %v534_v6, %v504_v2  ;;  %v3284_v6 = vld [vmem:[#allocation27_spill] sm:$0xff]  ;;  %v1542_v2 = vrot.slane %v1528_v13, 2 }
 0x16e   : > { %1006 = vrot.lane.b32.xlu0 %v3283_v29, %s1864_s14  ;;  %v604_v29 = vsel %vm533_vm7, %v593_v52, %v2573_v17  ;;  %v575_v41 = vadd.f32 %v569_v49, %v540_v5  ;;  %v1532_v17 = vmul.f32 %v2790_v56, %v2663_v16  ;;  %v3217_v52 = vrot.slane %v2803_v22, 1 }
 0x16f   : > { %v665_v49 = vrot.slane %v658_v32, 1  ;;  %v684_v5 = vrot.slane %v678_v9, 1  ;;  %v2840_v16 = vmul.f32 %v2819_v31, %v2346_v59  ;;  %v1544_v32 = vsel %vm1125_vm5, %v1542_v2, %v1543_v24  ;;  %v2852_v59 = vpop.permute.xlu1 %914 }
 0x170   : > { %v2805_v60 = vpop.permute.xlu0 %600  ;;  %1510 = vrot.lane.b32.xlu1 %v1503_v58, %s1864_s14  ;;  %v610_v58 = vadd.f32 %v604_v29, %v575_v41  ;;  %v1547_v9 = vrot.slane %v1532_v17, 2  ;;  %v3215_v41 = vrot.slane %v2832_v46, 1  ;;  %3287 = vst [vmem:[#allocation20_spill] sm:$0xff] %v2852_v59 }
 0x171   : > { %v667_v29 = vsel %vm664_vm4, %v665_v49, %v3217_v52  ;;  %v3214_v2 = vrot.slane %v2840_v16, 1  ;;  %v3288_v49 = vld [vmem:[#allocation28_spill] sm:$0xff]  ;;  %v3296_v52 = vld [vmem:[#allocation10_spill] sm:$0xff] }
 0x172   : > { %1043 = vrot.lane.b32.xlu0 %v3284_v6, %s1864_s14 }
 0x174   : > { %v628_v6 = vpop.permute.xlu0 %627  ;;  %1514 = vrot.lane.b32.xlu1 %v1502_v1, %s1864_s14  ;;  %v686_v1 = vsel %vm664_vm4, %v684_v5, %v3216_v63 }
 0x175   : > { %v639_v13 = vsel %vm533_vm7, %v628_v6, %v2614_v7  ;;  %v703_v7 = vrot.slane %v697_v0, 1  ;;  %v3289_v0 = vrot.slane %v3288_v49, 1 }
 0x176   : > { %v645_v47 = vadd.f32 %v639_v13, %v610_v58  ;;  %1047 = vrot.lane.b32.xlu0 %v3286_v18, %s1864_s14  ;;  %v722_v58 = vrot.slane %v716_v37, 1  ;;  %v1548_v13 = vsel %vm1125_vm5, %v1543_v24, %v1547_v9 }
 0x178   : > { %v673_v50 = vadd.f32 %v667_v29, %v645_v47  ;;  %v2850_v6 = vpop.permute.xlu0 %635  ;;  %1551 = vrot.lane.b32.xlu1 %v1544_v32, %s1864_s14  ;;  %v705_v47 = vsel %vm664_vm4, %v703_v7, %v3215_v41  ;;  %v724_v5 = vsel %vm664_vm4, %v722_v58, %v3214_v2  ;;  %v2874_v32 = vpop.permute.xlu1 %918  ;;  %v2885_v58 = vld [vmem:[#allocation2 + $0x20] sm:$0xf]  ;;  %v3294_v2 = vld [vmem:[#allocation11_spill] sm:$0xff]  ;;  %v309_v41 = vld [vmem:[#allocation2 + $0xb0] sm:$0x3] }
 0x179   : > { %3290 = vst [vmem:[#allocation26_spill] sm:$0xff] %v2874_v32  ;;  %3292 = vst [vmem:[#allocation27_spill] sm:$0xff] %v2885_v58  ;;  %v3297_v32 = vld [vmem:[#allocation13_spill] sm:$0xff] }
 0x17a   : > { %v692_v17 = vadd.f32 %v686_v1, %v673_v50  ;;  %1051 = vrot.lane.b32.xlu0 %v3289_v0, %s1864_s14  ;;  %v2876_v50 = vld [vmem:[#allocation2] sm:$0xfc]  ;;  %v2878_v1 = vld [vmem:[#allocation2 + $0x10] sm:$0xff] }
 0x17b   : > { %3291 = vst [vmem:[#allocation23_spill] sm:$0xff] %v2876_v50  ;;  %v1214_v7 = vmul.f32 %v2878_v1, %v2555_v28 }
 0x17c   : > { %v385_v18 = vpop.permute.xlu0 %384  ;;  %v711_v29 = vadd.f32 %v705_v47, %v692_v17  ;;  %1555 = vrot.lane.b32.xlu1 %v1548_v13, %s1864_s14  ;;  %v1212_v17 = vmul.f32 %v2555_v28, %v2876_v50  ;;  %v2889_v0 = vpop.permute.xlu1 %955  ;;  %v300_v13 = vld [vmem:[#allocation2 + $0x20] sm:$0x3] }
 0x17d   : > { %3293 = vst [vmem:[#allocation31_spill] sm:$0xff] %v2889_v0  ;;  %v306_v47 = vld [vmem:[#allocation2 + $0x80] sm:$0x3]  ;;  %v314_v56 = vmul.f32 %v3296_v52, %v300_v13  ;;  %v3298_v0 = vld [vmem:[#allocation19_spill] sm:$0xff] }
 0x17e   : > { %1088 = vrot.lane.b32.xlu0 %v2405_v8, %s1864_s14  ;;  %v2872_v37 = vadd.f32 %v724_v5, %v711_v29  ;;  %v303_v8 = vld [vmem:[#allocation2 + $0x50] sm:$0x3]  ;;  %v1225_v29 = vrot.slane %v1214_v7, 2  ;;  %v1216_v5 = vmul.f32 %v2555_v28, %v2885_v58  ;;  %v1224_v63 = vrot.slane %v1212_v17, 2  ;;  %v3299_v58 = vld [vmem:[#allocation15_spill] sm:$0xff] }
 0x17f   : > { %v330_v59 = vmul.f32 %v3297_v32, %v306_v47  ;;  %v394_v20 = vsel %vm392_vm6, %v385_v18, %v3298_v0  ;;  %v3301_v47 = vld [vmem:[#allocation22_spill] sm:$0xff] }
 0x180   : > { %v421_v24 = vpop.permute.xlu0 %420  ;;  %1559 = vrot.lane.b32.xlu1 %v1547_v9, %s1864_s14  ;;  %v322_v9 = vmul.f32 %v3294_v2, %v303_v8  ;;  %v1226_v7 = vsel %vm1125_vm5, %v1224_v63, %v1225_v29  ;;  %v1230_v50 = vrot.slane %v1216_v5, 2  ;;  %v338_v2 = vmul.f32 %v3299_v58, %v309_v41  ;;  %v3300_v8 = vld [vmem:[#allocation29_spill] sm:$0xff]  ;;  %v3302_v63 = vld [vmem:[#allocation36_spill] sm:$0xff] }
 0x181   : > { %v429_v17 = vsel %vm392_vm6, %v421_v24, %v3300_v8  ;;  %v400_v32 = vadd.f32 %v394_v20, %v2402_v54  ;;  %v395_v18 = vsel %vm392_vm6, %v2665_v14, %v3301_v47  ;;  %v3303_v5 = vld [vmem:[#allocation32_spill] sm:$0xff]  ;;  %v649_v24 = vld [vmem:[#allocation2 + $0x20] sm:$0x7] }
 0x182   : > { %1092 = vrot.lane.b32.xlu0 %v2412_v19, %s1864_s14  ;;  %v3295_v19 = vrot.slane %v2388_v48, 1  ;;  %v325_v28 = vadd.f32 %v322_v9, %v314_v56  ;;  %v2904_v48 = vpop.permute.xlu1 %959  ;;  %v1231_v41 = vsel %vm1125_vm5, %v1225_v29, %v1230_v50 }
 0x183   : > { %v435_v0 = vadd.f32 %v429_v17, %v400_v32  ;;  %v653_v32 = vld [vmem:[#allocation2 + $0x80] sm:$0x7] }
 0x184   : > { %v456_v49 = vpop.permute.xlu0 %455  ;;  %v333_v52 = vadd.f32 %v330_v59, %v325_v28  ;;  %v430_v59 = vsel %vm392_vm6, %v2684_v30, %v3303_v5  ;;  %v660_v30 = vmul.f32 %v2785_v26, %v649_v24  ;;  %v655_v26 = vld [vmem:[#allocation2 + $0xb0] sm:$0x7] }
 0x185   : > { %v464_v56 = vsel %vm392_vm6, %v456_v49, %v3302_v63  ;;  %v3304_v49 = vld [vmem:[#allocation38_spill] sm:$0xff] }
 0x186   : > { %1096 = vrot.lane.b32.xlu0 %v3295_v19, %s1864_s14  ;;  %v341_v58 = vadd.f32 %v338_v2, %v333_v52  ;;  %v470_v9 = vadd.f32 %v464_v56, %v435_v0  ;;  %v2921_v19 = vpop.permute.xlu1 %963  ;;  %v465_v29 = vsel %vm392_vm6, %v2708_v27, %v3304_v49  ;;  %v651_v2 = vld [vmem:[#allocation2 + $0x50] sm:$0x7]  ;;  %v668_v63 = vrot.slane %v660_v30, 1 }
 0x187   : > { %v718_v0 = vmul.f32 %v2819_v31, %v655_v26  ;;  %v3308_v31 = vrot.slane %v2816_v11, 1  ;;  %v3312_v11 = vrot.slane %v2840_v16, 1 }
 0x188   : > { %v491_v61 = vpop.permute.xlu0 %490  ;;  %v401_v20 = vadd.f32 %v395_v18, %v341_v58  ;;  %v571_v18 = vsel %vm533_vm7, %v2766_v33, %v2563_v55  ;;  %v3306_v55 = vld [vmem:[#allocation37_spill] sm:$0xff]  ;;  %v641_v33 = vsel %vm533_vm7, %v2850_v6, %v2645_v36 }
 0x189   : > { %v499_v54 = vsel %vm392_vm6, %v491_v61, %v2496_v51  ;;  %v500_v51 = vsel %vm392_vm6, %v2725_v38, %v2507_v15  ;;  %v3305_v38 = vld [vmem:[#allocation34_spill] sm:$0xff] }
 0x18a   : > { %1234 = vrot.lane.b32.xlu0 %v1226_v7, %s1863_s9  ;;  %v436_v28 = vadd.f32 %v430_v59, %v401_v20  ;;  %v505_v8 = vadd.f32 %v499_v54, %v470_v9 }
 0x18c   : > { %v526_v13 = vpop.permute.xlu0 %525  ;;  %v471_v17 = vadd.f32 %v465_v29, %v436_v28 }
 0x18d   : > { %v535_v7 = vsel %vm533_vm7, %v526_v13, %v2522_v25  ;;  %v536_v25 = vsel %vm533_vm7, %v2738_v23, %v2533_v4  ;;  %v680_v13 = vmul.f32 %v2787_v35, %v651_v2  ;;  %v699_v4 = vmul.f32 %v2810_v10, %v653_v32 }
 0x18e   : > { %1238 = vrot.lane.b32.xlu0 %v1231_v41, %s1863_s9  ;;  %v541_v52 = vadd.f32 %v535_v7, %v505_v8  ;;  %v506_v47 = vadd.f32 %v500_v51, %v471_v17  ;;  %v3307_v10 = vrot.slane %v2803_v22, 1  ;;  %v3309_v7 = vld [vmem:[#allocation33_spill] sm:$0xff]  ;;  %v3311_v22 = vrot.slane %v2832_v46, 1 }
 0x18f   : > { %v687_v41 = vrot.slane %v680_v13, 1  ;;  %v3310_v36 = vrot.slane %v3309_v7, 2 }
 0x190   : > { %v562_v14 = vpop.permute.xlu0 %561  ;;  %v542_v23 = vadd.f32 %v536_v25, %v506_v47  ;;  %v669_v54 = vsel %vm664_vm4, %v3307_v10, %v668_v63 }
 0x191   : > { %v570_v61 = vsel %vm533_vm7, %v562_v14, %v2548_v39  ;;  %v2943_v39 = vpop.permute.xlu1 %1000  ;;  %v688_v9 = vsel %vm664_vm4, %v3308_v31, %v687_v41  ;;  %v725_v14 = vrot.slane %v718_v0, 1 }
 0x192   : > { %1242 = vrot.lane.b32.xlu0 %v1230_v50, %s1863_s9  ;;  %v576_v15 = vadd.f32 %v570_v61, %v541_v52  ;;  %v577_v5 = vadd.f32 %v571_v18, %v542_v23 }
 0x193   : > { %v726_v51 = vsel %vm664_vm4, %v3312_v11, %v725_v14 }
 0x194   : > { %v597_v27 = vpop.permute.xlu0 %596 }
 0x195   : > { %v605_v50 = vsel %vm533_vm7, %v597_v27, %v2580_v40  ;;  %v606_v40 = vsel %vm533_vm7, %v2805_v60, %v2601_v62  ;;  %v706_v62 = vrot.slane %v699_v4, 1  ;;  %v3315_v4 = vld [vmem:[#allocation14_spill] sm:$0xff] }
 0x196   : > { %1279 = vrot.lane.b32.xlu0 %v3305_v38, %s1863_s9  ;;  %v611_v35 = vadd.f32 %v605_v50, %v576_v15  ;;  %v612_v60 = vadd.f32 %v606_v40, %v577_v5  ;;  %v3313_v50 = vrot.slane %v2455_v12, 2  ;;  %v1394_v23 = vmul.f32 %v2878_v1, %v3315_v4  ;;  %v3319_v5 = vld [vmem:[#allocation27_spill] sm:$0xff] }
 0x197   : > { %v707_v6 = vsel %vm664_vm4, %v3311_v22, %v706_v62  ;;  %v1766_v22 = vld [vmem:[#allocation2 + $0x30] sm:$0xfc] }
 0x198   : > { %v632_v56 = vpop.permute.xlu0 %631  ;;  %v647_v49 = vadd.f32 %v641_v33, %v612_v60  ;;  %v1405_v0 = vrot.slane %v1394_v23, 2  ;;  %v3320_v33 = vld [vmem:[#allocation39_spill] sm:$0xff]  ;;  %v3322_v60 = vld [vmem:[#allocation12_spill] sm:$0xff] }
 0x199   : > { %v640_v58 = vsel %vm533_vm7, %v632_v56, %v2631_v42  ;;  %v2963_v42 = vpop.permute.xlu1 %1004  ;;  %v3321_v10 = vrot.slane %v3320_v33, 2  ;;  %v3052_v23 = vld [vmem:[#allocation2 + $0x70] sm:$0xff] }
 0x19a   : > { %v646_v59 = vadd.f32 %v640_v58, %v611_v35  ;;  %1283 = vrot.lane.b32.xlu0 %v3306_v55, %s1863_s9  ;;  %v675_v30 = vadd.f32 %v668_v63, %v647_v49  ;;  %v3314_v63 = vld [vmem:[#allocation30_spill] sm:$0xff] }
 0x19c   : > { %v674_v20 = vadd.f32 %v669_v54, %v646_v59  ;;  %v782_v24 = vpop.permute.xlu0 %781  ;;  %v694_v32 = vadd.f32 %v687_v41, %v675_v30  ;;  %v1396_v59 = vmul.f32 %v3315_v4, %v3319_v5  ;;  %v1770_v5 = vld [vmem:[#allocation2 + $0x80] sm:$0xf] }
 0x19d   : > { %v2982_v52 = vpop.permute.xlu1 %1008 }
 0x19e   : > { %v693_v29 = vadd.f32 %v688_v9, %v674_v20  ;;  %1287 = vrot.lane.b32.xlu0 %v3310_v36, %s1863_s9  ;;  %v713_v13 = vadd.f32 %v706_v62, %v694_v32  ;;  %v1410_v31 = vrot.slane %v1396_v59, 2  ;;  %v1768_v32 = vld [vmem:[#allocation2 + $0x50] sm:$0xf] }
 0x1a0   : > { %v774_v28 = vpop.permute.xlu0 %773  ;;  %v712_v2 = vadd.f32 %v707_v6, %v693_v29  ;;  %v3323_v29 = vld [vmem:[#allocation16_spill] sm:$0xff]  ;;  %v1411_v36 = vsel %vm1125_vm5, %v1405_v0, %v1410_v31  ;;  %v3324_v6 = vld [vmem:[#allocation21_spill] sm:$0xff] }
 0x1a1   : > { %v785_v8 = vsel %vm392_vm6, %v774_v28, %v2656_v57  ;;  %v2988_v16 = vpop.permute.xlu1 %1045  ;;  %v1437_v28 = vmul.f32 %v1766_v22, %v3324_v6 }
 0x1a2   : > { %v791_v61 = vadd.f32 %v785_v8, %v2872_v37  ;;  %1324 = vrot.lane.b32.xlu0 %v2470_v3, %s1863_s9  ;;  %v731_v17 = vadd.f32 %v726_v51, %v712_v2  ;;  %v3030_v2 = vld [vmem:[#allocation2 + $0x40] sm:$0xff] }
 0x1a3   : > { %v1439_v8 = vmul.f32 %v3030_v2, %v3324_v6 }
 0x1a4   : > { %v778_v46 = vpop.permute.xlu0 %777 }
 0x1a5   : > { %v786_v27 = vsel %vm392_vm6, %v778_v46, %v2674_v45  ;;  %v787_v45 = vsel %vm392_vm6, %v782_v24, %v2692_v44  ;;  %v3001_v26 = vpop.permute.xlu1 %1049  ;;  %v3316_v44 = vld [vmem:[#allocation40_spill] sm:$0xff]  ;;  %v1449_v46 = vrot.slane %v1437_v28, 2 }
 0x1a6   : > { %v792_v25 = vadd.f32 %v786_v27, %v731_v17  ;;  %1328 = vrot.lane.b32.xlu0 %v2478_v21, %s1863_s9  ;;  %v732_v21 = vadd.f32 %v725_v14, %v713_v13  ;;  %v1450_v27 = vrot.slane %v1439_v8, 2  ;;  %v3326_v13 = vld [vmem:[#allocation20_spill] sm:$0xff] }
 0x1a8   : > { %v819_v57 = vpop.permute.xlu0 %818 }
 0x1a9   : > { %v830_v37 = vsel %vm392_vm6, %v819_v57, %v2704_v53  ;;  %v793_v53 = vadd.f32 %v787_v45, %v732_v21  ;;  %v3011_v41 = vpop.permute.xlu1 %1053 }
 0x1aa   : > { %v836_v3 = vadd.f32 %v830_v37, %v791_v61  ;;  %1332 = vrot.lane.b32.xlu0 %v3313_v50, %s1863_s9  ;;  %v3325_v61 = vld [vmem:[#allocation25_spill] sm:$0xff]  ;;  %v1451_v50 = vsel %vm1125_vm5, %v1449_v46, %v1450_v27 }
 0x1ac   : > { %v823_v47 = vpop.permute.xlu0 %822 }
 0x1ad   : > { %v831_v15 = vsel %vm392_vm6, %v823_v47, %v2714_v43  ;;  %v3317_v43 = vld [vmem:[#allocation23_spill] sm:$0xff]  ;;  %v3024_v14 = vpop.permute.xlu1 %1090 }
 0x1ae   : > { %v837_v38 = vadd.f32 %v831_v15, %v792_v25  ;;  %1369 = vrot.lane.b32.xlu0 %v2486_v34, %s1863_s9  ;;  %v1392_v56 = vmul.f32 %v3315_v4, %v3317_v43  ;;  %v3318_v34 = vld [vmem:[#allocation17_spill] sm:$0xff]  ;;  %v1441_v25 = vmul.f32 %v1768_v32, %v3324_v6 }
 0x1b0   : > { %v827_v18 = vpop.permute.xlu0 %826  ;;  %v1404_v54 = vrot.slane %v1392_v56, 2  ;;  %v1455_v47 = vrot.slane %v1441_v25, 2 }
 0x1b1   : > { %v832_v12 = vsel %vm392_vm6, %v827_v18, %v3314_v63  ;;  %v3035_v30 = vpop.permute.xlu1 %1094  ;;  %v3328_v63 = vld [vmem:[#allocation35_spill] sm:$0xff] }
 0x1b2   : > { %v838_v35 = vadd.f32 %v832_v12, %v793_v53  ;;  %1373 = vrot.lane.b32.xlu0 %v3316_v44, %s1863_s9  ;;  %v1406_v24 = vsel %vm1125_vm5, %v1404_v54, %v1405_v0  ;;  %v1456_v18 = vsel %vm1125_vm5, %v1450_v27, %v1455_v47  ;;  %v3329_v12 = vld [vmem:[#allocation18_spill] sm:$0xff] }
 0x1b3   : > { %v1482_v4 = vmul.f32 %v3329_v12, %v3328_v63  ;;  %v1486_v59 = vmul.f32 %v1770_v5, %v3329_v12  ;;  %v1157_v5 = vstv %s1693_s27 }
 0x1b4   : > { %v864_v40 = vpop.permute.xlu0 %863 }
 0x1b5   : > { %v875_v58 = vsel %vm392_vm6, %v864_v40, %v3318_v34  ;;  %v3045_v15 = vpop.permute.xlu1 %1098  ;;  %v3330_v40 = vld [vmem:[#allocation31_spill] sm:$0xff] }
 0x1b6   : > { %v881_v55 = vadd.f32 %v875_v58, %v836_v3  ;;  %1377 = vrot.lane.b32.xlu0 %v3321_v10, %s1863_s9  ;;  %v1494_v58 = vrot.slane %v1482_v4, 2  ;;  %s1691_s9 = sld [smem:[#allocation7 + $0x6]] }
 0x1b8   : > { %v868_v62 = vpop.permute.xlu0 %867 }
 0x1b9   : > { %v876_v20 = vsel %vm392_vm6, %v868_v62, %v3322_v60  ;;  %v3057_v56 = vpop.permute.xlu1 %1236  ;;  %v1500_v62 = vrot.slane %v1486_v59, 2  ;;  %v1112_v59 = vld [vmem:[#allocation2 + $0x50] sm:$0xf] }
 0x1ba   : > { %v882_v9 = vadd.f32 %v876_v20, %v837_v38  ;;  %1414 = vrot.lane.b32.xlu0 %v1406_v24, %s1864_s14  ;;  %v3327_v38 = vld [vmem:[#allocation26_spill] sm:$0xff] }
 0x1bc   : > { %v872_v49 = vpop.permute.xlu0 %871  ;;  %v1118_v63 = vstv %s1691_s9 }
 0x1bd   : > { %v877_v7 = vsel %vm392_vm6, %v872_v49, %v3323_v29  ;;  %v3067_v20 = vpop.permute.xlu1 %1240  ;;  %v1771_v49 = vld [vmem:[#allocation2 + $0x90] sm:$0xfc] }
 0x1be   : > { %v883_v11 = vadd.f32 %v877_v7, %v838_v35  ;;  %1418 = vrot.lane.b32.xlu0 %v1411_v36, %s1864_s14  ;;  %v1484_v35 = vmul.f32 %v3052_v23, %v3329_v12  ;;  %v3331_v29 = vld [vmem:[#allocation24_spill] sm:$0xff]  ;;  %v3073_v36 = vld [vmem:[#allocation2 + $0xa0] sm:$0xff]  ;;  %v1138_v12 = vstv %s1692_s26 }
 0x1bf   : > { %v1527_v7 = vmul.f32 %v1771_v49, %v3331_v29 }
 0x1c0   : > { %v909_v51 = vpop.permute.xlu0 %908  ;;  %v1495_v0 = vrot.slane %v1484_v35, 2  ;;  %v1120_v35 = vmul.f32 %v2878_v1, %v1118_v63 }
 0x1c1   : > { %v920_v17 = vsel %vm392_vm6, %v909_v51, %v3325_v61  ;;  %v3078_v28 = vpop.permute.xlu1 %1244  ;;  %v1773_v51 = vld [vmem:[#allocation2 + $0xb0] sm:$0xf] }
 0x1c2   : > { %v926_v57 = vadd.f32 %v920_v17, %v881_v55  ;;  %1422 = vrot.lane.b32.xlu0 %v1410_v31, %s1864_s14  ;;  %v1496_v54 = vsel %vm1125_vm5, %v1494_v58, %v1495_v0  ;;  %v1531_v61 = vmul.f32 %v1773_v51, %v3331_v29  ;;  %v1110_v58 = vld [vmem:[#allocation2 + $0x20] sm:$0xf] }
 0x1c4   : > { %v913_v37 = vpop.permute.xlu0 %912  ;;  %v1545_v25 = vrot.slane %v1531_v61, 2 }
 0x1c5   : > { %v921_v3 = vsel %vm392_vm6, %v913_v37, %v3326_v13  ;;  %v3088_v37 = vpop.permute.xlu1 %1281 }
 0x1c6   : > { %v927_v45 = vadd.f32 %v921_v3, %v882_v9  ;;  %1459 = vrot.lane.b32.xlu0 %v1451_v50, %s1864_s14  ;;  %v1501_v9 = vsel %vm1125_vm5, %v1495_v0, %v1500_v62  ;;  %v1113_v0 = vld [vmem:[#allocation2 + $0x60] sm:$0xfc] }
 0x1c7   : > { %v1158_v1 = vmul.f32 %v1157_v5, %v1113_v0 }
 0x1c8   : > { %v917_v21 = vpop.permute.xlu0 %916 }
 0x1c9   : > { %v922_v53 = vsel %vm392_vm6, %v917_v21, %v3327_v38 }
 0x1ca   : > { %v928_v44 = vadd.f32 %v922_v53, %v883_v11  ;;  %1463 = vrot.lane.b32.xlu0 %v1456_v18, %s1864_s14  ;;  %v1109_v53 = vld [vmem:[#allocation2] sm:$0xfc]  ;;  %v1111_v18 = vld [vmem:[#allocation2 + $0x30] sm:$0xfc] }
 0x1cc   : > { %v954_v43 = vpop.permute.xlu0 %953 }
 0x1cd   : > { %v965_v34 = vsel %vm533_vm7, %v954_v43, %v3330_v40  ;;  %v1119_v40 = vmul.f32 %v1118_v63, %v1109_v53 }
 0x1ce   : > { %v971_v55 = vadd.f32 %v965_v34, %v926_v57  ;;  %1467 = vrot.lane.b32.xlu0 %v1455_v47, %s1864_s14  ;;  %v3094_v47 = vpop.permute.xlu1 %1285  ;;  %v1140_v34 = vmul.f32 %v3030_v2, %v1138_v12  ;;  %v1141_v2 = vmul.f32 %v1138_v12, %v1112_v59 }
 0x1d0   : > { %v958_v33 = vpop.permute.xlu0 %957 }
 0x1d1   : > { %v966_v10 = vsel %vm533_vm7, %v958_v33, %v2904_v48  ;;  %v1529_v48 = vmul.f32 %v3073_v36, %v3331_v29  ;;  %v1127_v33 = vrot.slane %v1120_v35, 2  ;;  %v1114_v29 = vld [vmem:[#allocation2 + $0x80] sm:$0xf] }
 0x1d2   : > { %v972_v60 = vadd.f32 %v966_v10, %v927_v45  ;;  %1504 = vrot.lane.b32.xlu0 %v1496_v54, %s1864_s14  ;;  %v1115_v10 = vld [vmem:[#allocation2 + $0x90] sm:$0xfc]  ;;  %v1176_v54 = vstv %s1694_s28  ;;  %v1160_v61 = vmul.f32 %v1157_v5, %v1114_v29 }
 0x1d3   : > { %v1540_v11 = vrot.slane %v1529_v48, 2  ;;  %v1177_v48 = vmul.f32 %v1176_v54, %v1115_v10 }
 0x1d4   : > { %v962_v24 = vpop.permute.xlu0 %961 }
 0x1d5   : > { %v967_v31 = vsel %vm533_vm7, %v962_v24, %v2921_v19  ;;  %v1539_v19 = vrot.slane %v1527_v7, 2  ;;  %v1546_v3 = vsel %vm1125_vm5, %v1540_v11, %v1545_v25  ;;  %v1126_v24 = vrot.slane %v1119_v40, 2 }
 0x1d6   : > { %v973_v22 = vadd.f32 %v967_v31, %v928_v44  ;;  %1508 = vrot.lane.b32.xlu0 %v1501_v9, %s1864_s14  ;;  %v3102_v44 = vpop.permute.xlu1 %1289  ;;  %v1146_v9 = vrot.slane %v1140_v34, 2 }
 0x1d7   : > { %v1541_v32 = vsel %vm1125_vm5, %v1539_v19, %v1540_v11  ;;  %v1116_v19 = vld [vmem:[#allocation2 + $0xb0] sm:$0xf] }
 0x1d8   : > { %v999_v6 = vpop.permute.xlu0 %998 }
 0x1d9   : > { %v1010_v8 = vsel %vm533_vm7, %v999_v6, %v2943_v39  ;;  %v1128_v6 = vsel %vm1125_vm5, %v1126_v24, %v1127_v33 }
 0x1da   : > { %v1016_v17 = vadd.f32 %v1010_v8, %v971_v55  ;;  %1512 = vrot.lane.b32.xlu0 %v1500_v62, %s1864_s14  ;;  %v1121_v62 = vmul.f32 %v1118_v63, %v1110_v58  ;;  %v3108_v7 = vpop.permute.xlu1 %1326 }
 0x1dc   : > { %v1003_v46 = vpop.permute.xlu0 %1002  ;;  %v1129_v11 = vrot.slane %v1121_v62, 2 }
 0x1dd   : > { %v1011_v27 = vsel %vm533_vm7, %v1003_v46, %v2963_v42 }
 0x1de   : > { %v1017_v57 = vadd.f32 %v1011_v27, %v972_v60  ;;  %1549 = vrot.lane.b32.xlu0 %v1541_v32, %s1864_s14  ;;  %v1159_v60 = vmul.f32 %v3052_v23, %v1157_v5  ;;  %v1164_v23 = vrot.slane %v1158_v1, 2  ;;  %v1148_v27 = vrot.slane %v1141_v2, 2 }
 0x1e0   : > { %v1007_v39 = vpop.permute.xlu0 %1006  ;;  %v1165_v51 = vrot.slane %v1159_v60, 2  ;;  %v1149_v53 = vsel %vm1125_vm5, %v1146_v9, %v1148_v27 }
 0x1e1   : > { %v1012_v13 = vsel %vm533_vm7, %v1007_v39, %v2982_v52  ;;  %v1179_v39 = vmul.f32 %v1176_v54, %v1116_v19 }
 0x1e2   : > { %v1018_v50 = vadd.f32 %v1012_v13, %v973_v22  ;;  %1553 = vrot.lane.b32.xlu0 %v1546_v3, %s1864_s14  ;;  %v1178_v22 = vmul.f32 %v3073_v36, %v1176_v54  ;;  %v3117_v3 = vpop.permute.xlu1 %1330 }
 0x1e3   : > { %v1186_v63 = vrot.slane %v1179_v39, 2 }
 0x1e4   : > { %v1044_v42 = vpop.permute.xlu0 %1043 }
 0x1e5   : > { %v1055_v45 = vsel %vm533_vm7, %v1044_v42, %v2988_v16  ;;  %v1139_v16 = vmul.f32 %v1138_v12, %v1111_v18  ;;  %v1166_v42 = vsel %vm1125_vm5, %v1164_v23, %v1165_v51 }
 0x1e6   : > { %v1061_v21 = vadd.f32 %v1055_v45, %v1016_v17  ;;  %1557 = vrot.lane.b32.xlu0 %v1545_v25, %s1864_s14  ;;  %v1167_v45 = vrot.slane %v1160_v61, 2  ;;  %v3126_v58 = vpop.permute.xlu1 %1334  ;;  %s1570_s14 = sld [smem:[#allocation3]] }
 0x1e7   : > { %v1145_v31 = vrot.slane %v1139_v16, 2 }
 0x1e8   : > { %v1048_v38 = vpop.permute.xlu0 %1047 }
 0x1e9   : > { %v1056_v52 = vsel %vm533_vm7, %v1048_v38, %v3001_v26  ;;  %v1147_v17 = vsel %vm1125_vm5, %v1145_v31, %v1146_v9 }
 0x1ea   : > { %v1062_v4 = vadd.f32 %v1056_v52, %v1017_v57  ;;  %v1184_v57 = vrot.slane %v1178_v22, 2  ;;  %v1372_v62 = vpop.permute.xlu1 %1371 }
 0x1ec   : > { %v1052_v43 = vpop.permute.xlu0 %1051  ;;  %v1187_v5 = vsel %vm1125_vm5, %v1184_v57, %v1186_v63 }
 0x1ed   : > { %v1057_v26 = vsel %vm533_vm7, %v1052_v43, %v3011_v41  ;;  %v1168_v43 = vsel %vm1125_vm5, %v1165_v51, %v1167_v45 }
 0x1ee   : > { %v1063_v55 = vadd.f32 %v1057_v26, %v1018_v50  ;;  %v1130_v50 = vsel %vm1125_vm5, %v1127_v33, %v1129_v11 }
 0x1f0   : > { %v1089_v49 = vpop.permute.xlu0 %1088 }
 0x1f1   : > { %v1100_v41 = vsel %vm533_vm7, %v1089_v49, %v3024_v14  ;;  %v1183_v14 = vrot.slane %v1177_v48, 2 }
 0x1f2   : > { %v1106_v8 = vadd.f32 %v1100_v41, %v1061_v21 }
 0x1f3   : > { %v1185_v18 = vsel %vm1125_vm5, %v1183_v14, %v1184_v57 }
 0x1f4   : > { %v1134_v46 = vadd.f32 %v1128_v6, %v1106_v8  ;;  %v1093_v32 = vpop.permute.xlu0 %1092 }
 0x1f5   : > { %v1101_v25 = vsel %vm533_vm7, %v1093_v32, %v3035_v30 }
 0x1f6   : > { %v1153_v36 = vadd.f32 %v1147_v17, %v1134_v46  ;;  %v1107_v13 = vadd.f32 %v1101_v25, %v1062_v4 }
 0x1f8   : > { %v1135_v21 = vadd.f32 %v1130_v50, %v1107_v13  ;;  %v1097_v38 = vpop.permute.xlu0 %1096  ;;  %v1172_v52 = vadd.f32 %v1166_v42, %v1153_v36 }
 0x1f9   : > { %v1102_v30 = vsel %vm533_vm7, %v1097_v38, %v3045_v15 }
 0x1fa   : > { %v1154_v12 = vadd.f32 %v1149_v53, %v1135_v21  ;;  %v1108_v4 = vadd.f32 %v1102_v30, %v1063_v55  ;;  %v1191_v35 = vadd.f32 %v1185_v18, %v1172_v52 }
 0x1fc   : > { %v1136_v40 = vadd.f32 %v1129_v11, %v1108_v4  ;;  %v1235_v16 = vpop.permute.xlu0 %1234  ;;  %v1173_v34 = vadd.f32 %v1168_v43, %v1154_v12 }
 0x1fd   : > { %v1246_v0 = vsel %vm392_vm6, %v1235_v16, %v3057_v56  ;;  %v1376_v56 = vpop.permute.xlu1 %1375 }
 0x1fe   : > { %v1155_v26 = vadd.f32 %v1148_v27, %v1136_v40  ;;  %v1252_v15 = vadd.f32 %v1246_v0, %v1191_v35  ;;  %v1192_v59 = vadd.f32 %v1187_v5, %v1173_v34 }
 0x200   : > { %v1239_v33 = vpop.permute.xlu0 %1238  ;;  %v1174_v10 = vadd.f32 %v1167_v45, %v1155_v26 }
 0x201   : > { %v1247_v55 = vsel %vm392_vm6, %v1239_v33, %v3067_v20  ;;  %v1380_v2 = vpop.permute.xlu1 %1379 }
 0x202   : > { %v1253_v54 = vadd.f32 %v1247_v55, %v1192_v59  ;;  %v1193_v1 = vadd.f32 %v1186_v63, %v1174_v10 }
 0x204   : > { %v1243_v60 = vpop.permute.xlu0 %1242 }
 0x205   : > { %v1248_v24 = vsel %vm392_vm6, %v1243_v60, %v3078_v28  ;;  %v1417_v48 = vpop.permute.xlu1 %1416 }
 0x206   : > { %v1254_v31 = vadd.f32 %v1248_v24, %v1193_v1  ;;  %v1571_v1 = vstv %s1570_s14 }
 0x208   : > { %v1280_v9 = vpop.permute.xlu0 %1279 }
 0x209   : > { %v1421_v6 = vpop.permute.xlu1 %1420  ;;  %v1291_v36 = vsel %vm392_vm6, %v1280_v9, %v3088_v37 }
 0x20a   : > { %v1297_v45 = vadd.f32 %v1291_v36, %v1252_v15 }
 0x20c   : > { %v1284_v49 = vpop.permute.xlu0 %1283 }
 0x20d   : > { %v1425_v20 = vpop.permute.xlu1 %1424  ;;  %v1292_v21 = vsel %vm392_vm6, %v1284_v49, %v3094_v47 }
 0x20e   : > { %v1298_v18 = vadd.f32 %v1292_v21, %v1253_v54 }
 0x210   : > { %v1288_v29 = vpop.permute.xlu0 %1287 }
 0x211   : > { %v1462_v23 = vpop.permute.xlu1 %1461 }
 0x214   : > { %v1325_v41 = vpop.permute.xlu0 %1324 }
 0x215   : > { %v1466_v17 = vpop.permute.xlu1 %1465  ;;  %v1336_v42 = vsel %vm392_vm6, %v1325_v41, %v3108_v7  ;;  %v1293_v7 = vsel %vm392_vm6, %v1288_v29, %v3102_v44 }
 0x216   : > { %v1342_v52 = vadd.f32 %v1336_v42, %v1297_v45  ;;  %v1299_v0 = vadd.f32 %v1293_v7, %v1254_v31 }
 0x218   : > { %v1329_v22 = vpop.permute.xlu0 %1328 }
 0x219   : > { %v1470_v46 = vpop.permute.xlu1 %1469  ;;  %v1337_v30 = vsel %vm392_vm6, %v1329_v22, %v3117_v3 }
 0x21a   : > { %v1343_v35 = vadd.f32 %v1337_v30, %v1298_v18 }
 0x21c   : > { %v1333_v8 = vpop.permute.xlu0 %1332 }
 0x21d   : > { %v1507_v25 = vpop.permute.xlu1 %1506  ;;  %v1338_v3 = vsel %vm392_vm6, %v1333_v8, %v3126_v58 }
 0x21e   : > { %v1344_v59 = vadd.f32 %v1338_v3, %v1299_v0 }
 0x220   : > { %v1370_v19 = vpop.permute.xlu0 %1369 }
 0x221   : > { %v1511_v57 = vpop.permute.xlu1 %1510  ;;  %v1381_v38 = vsel %vm392_vm6, %v1370_v19, %v1372_v62 }
 0x222   : > { %v1387_v63 = vadd.f32 %v1381_v38, %v1342_v52 }
 0x224   : > { %v1374_v11 = vpop.permute.xlu0 %1373 }
 0x225   : > { %v1515_v50 = vpop.permute.xlu1 %1514  ;;  %v1382_v4 = vsel %vm392_vm6, %v1374_v11, %v1376_v56 }
 0x226   : > { %v1388_v5 = vadd.f32 %v1382_v4, %v1343_v35 }
 0x228   : > { %v1378_v51 = vpop.permute.xlu0 %1377 }
 0x229   : > { %v1552_v12 = vpop.permute.xlu1 %1551  ;;  %v1383_v44 = vsel %vm392_vm6, %v1378_v51, %v1380_v2 }
 0x22a   : > { %v1389_v24 = vadd.f32 %v1383_v44, %v1344_v59 }
 0x22c   : > { %v1415_v61 = vpop.permute.xlu0 %1414 }
 0x22d   : > { %v1426_v37 = vsel %vm533_vm7, %v1415_v61, %v1417_v48  ;;  %v1556_v54 = vpop.permute.xlu1 %1555 }
 0x22e   : > { %v1432_v43 = vadd.f32 %v1426_v37, %v1387_v63 }
 0x230   : > { %v1419_v28 = vpop.permute.xlu0 %1418 }
 0x231   : > { %v1427_v16 = vsel %vm533_vm7, %v1419_v28, %v1421_v6  ;;  %v1560_v19 = vpop.permute.xlu1 %1559 }
 0x232   : > { %v1433_v33 = vadd.f32 %v1427_v16, %v1388_v5 }
 0x234   : > { %v1423_v27 = vpop.permute.xlu0 %1422 }
 0x235   : > { %v1428_v62 = vsel %vm533_vm7, %v1423_v27, %v1425_v20 }
 0x236   : > { %v1434_v49 = vadd.f32 %v1428_v62, %v1389_v24 }
 0x238   : > { %v1460_v32 = vpop.permute.xlu0 %1459 }
 0x239   : > { %v1471_v47 = vsel %vm533_vm7, %v1460_v32, %v1462_v23 }
 0x23a   : > { %v1477_v26 = vadd.f32 %v1471_v47, %v1432_v43 }
 0x23c   : > { %v1464_v14 = vpop.permute.xlu0 %1463 }
 0x23d   : > { %v1472_v15 = vsel %vm533_vm7, %v1464_v14, %v1466_v17 }
 0x23e   : > { %v1478_v31 = vadd.f32 %v1472_v15, %v1433_v33 }
 0x240   : > { %v1468_v39 = vpop.permute.xlu0 %1467 }
 0x241   : > { %v1473_v56 = vsel %vm533_vm7, %v1468_v39, %v1470_v46 }
 0x242   : > { %v1479_v6 = vadd.f32 %v1473_v56, %v1434_v49 }
 0x244   : > { %v1505_v13 = vpop.permute.xlu0 %1504 }
 0x245   : > { %v1516_v34 = vsel %vm533_vm7, %v1505_v13, %v1507_v25 }
 0x246   : > { %v1522_v10 = vadd.f32 %v1516_v34, %v1477_v26 }
 0x248   : > { %v1509_v53 = vpop.permute.xlu0 %1508 }
 0x249   : > { %v1517_v58 = vsel %vm533_vm7, %v1509_v53, %v1511_v57 }
 0x24a   : > { %v1523_v2 = vadd.f32 %v1517_v58, %v1478_v31 }
 0x24c   : > { %v1513_v40 = vpop.permute.xlu0 %1512 }
 0x24d   : > { %v1518_v48 = vsel %vm533_vm7, %v1513_v40, %v1515_v50 }
 0x24e   : > { %v1524_v20 = vadd.f32 %v1518_v48, %v1479_v6 }
 0x250   : > { %v1550_v55 = vpop.permute.xlu0 %1549 }
 0x251   : > { %v1561_v60 = vsel %vm533_vm7, %v1550_v55, %v1552_v12 }
 0x252   : > { %v1567_v9 = vadd.f32 %v1561_v60, %v1522_v10 }
 0x254   : > { %v1572_v29 = vadd.f32 %v1571_v1, %v1567_v9  ;;  %v1554_v41 = vpop.permute.xlu0 %1553 }
 0x255   : > { %v1562_v22 = vsel %vm533_vm7, %v1554_v41, %v1556_v54 }
 0x256   : > { %1575 = vst [vmem:[%s205_s2] sm:$0xff] %v1572_v29  ;;  %v1568_v8 = vadd.f32 %v1562_v22, %v1523_v2 }
 0x258   : > { %v1573_v11 = vadd.f32 %v1571_v1, %v1568_v8  ;;  %v1558_v23 = vpop.permute.xlu0 %1557 }
 0x259   : > { %v1563_v51 = vsel %vm533_vm7, %v1558_v23, %v1560_v19 }
 0x25a   : > { %1576 = vst [vmem:[%s205_s2 + $0x8] sm:$0xff] %v1573_v11  ;;  %v1569_v61 = vadd.f32 %v1563_v51, %v1524_v20 }
 0x25c   : > { %v1574_v17 = vadd.f32 %v1571_v1, %v1569_v61 }
 0x25e   : > { %1577 = vst [vmem:[%s205_s2 + $0x10] sm:$0x3] %v1574_v17 }
 0x25f PF: > { %p15_p12 = scmp.ge.s32.totalorder %s1910_s18, 4   ;;  %s3332_s14 = smov %s1847_s15 }
 0x260   : > { %s3333_s15 = smov %s1851_s16  ;;  %s3334_s16 = smov %s1920_s21 }
 0x261   : > { %s3335_s17 = smov %s1910_s18  ;;  %17 = sbr.rel (!%p15_p12) target bundleno = 6 (0x6), region = 77 }
 0x266   :  { %1599 = vsyncpa [#allocation5], 1 }
 0x267   :  { %1601 = vsyncpa [#allocation5 + $0x1], 1 }
 0x268   :  { %1602 = vsyncpa [#allocation6], 1 }
 0x269   :  { %1604 = vsyncpa [#allocation6 + $0x1], 1 }

</bundles_post_ra>
